<compile_context>
chip_gen: v5e
topology: v5e:2x2
jax: 0.10.0
libtpu: 0.0.40
codegen_flags: <defaults>
</compile_context>

<pallas_src>
import math
from functools import partial

import jax
import jax.numpy as jnp
from jax.experimental import pallas as pl
from jax.experimental.pallas import tpu as pltpu


def _gelu_exact(x):
    # PyTorch nn.GELU() default = exact erf formulation.
    return 0.5 * x * (1.0 + jax.lax.erf(x * (1.0 / math.sqrt(2.0))))


def _layernorm(x, gamma, beta, eps=1e-6):
    mu = jnp.mean(x, axis=-1, keepdims=True)
    var = jnp.mean(jnp.square(x - mu), axis=-1, keepdims=True)
    return (x - mu) * jax.lax.rsqrt(var + eps) * gamma + beta


def transformer_block_kernel(
    x_ref,                      # (L, E)  full sequence for this batch element
    g1_ref, be1_ref,            # (1, E)  LayerNorm1
    wq_ref, bq_ref,             # (E, E), (1, E)   (scale pre-folded)
    wk_ref, bk_ref,             # (E, E), (1, E)
    wv_ref, bv_ref,             # (E, E), (1, E)
    wo_ref, bo_ref,             # (E, E), (1, E)
    g2_ref, be2_ref,            # (1, E)  LayerNorm2
    w1_ref, b1_ref,             # (E, 4E), (1, 4E)
    w2_ref, b2_ref,             # (4E, E), (1, E)
    o_ref,                      # (tLq, E)
    k_sc, v_sc,                 # (H, L, D) compute_dtype, persist across lq steps
    m_sc, l_sc, acc_sc,         # (H, tLq, 1), (H, tLq, 1), (H, tLq, D) f32
    *, num_heads, head_dim, kv_block, compute_dtype,
):
    H, D = num_heads, head_dim
    L, E = x_ref.shape
    tLq = o_ref.shape[0]
    tKv = kv_block
    nKv = L // tKv

    # ---- K/V projection for the whole sequence: once per batch element ----
    @pl.when(pl.program_id(1) == 0)
    def _compute_kv():
        x2_kv = _layernorm(x_ref[...].astype(jnp.float32), g1_ref[0], be1_ref[0])
        x2c = x2_kv.astype(compute_dtype)
        k = jnp.dot(x2c, wk_ref[...], preferred_element_type=jnp.float32) + bk_ref[0]
        v = jnp.dot(x2c, wv_ref[...], preferred_element_type=jnp.float32) + bv_ref[0]
        # head-major (H, L, D) so attention is a batched, lane-dense einsum;
        # cast before the transpose (halves XLU bytes on the bf16 path).
        k_sc[...] = jnp.transpose(k.astype(compute_dtype).reshape(L, H, D), (1, 0, 2))
        v_sc[...] = jnp.transpose(v.astype(compute_dtype).reshape(L, H, D), (1, 0, 2))

    # ---- Q-row tile of x, sliced from the (single) full-sequence block ----
    row0 = pl.multiple_of(pl.program_id(1) * tLq, tLq)
    x_q = x_ref[pl.ds(row0, tLq), :].astype(jnp.float32)

    # ---- x2 = LayerNorm1(x); Q projection (scale already folded into wq/bq) ----
    x2_q = _layernorm(x_q, g1_ref[0], be1_ref[0])
    q = jnp.dot(x2_q.astype(compute_dtype), wq_ref[...],
                preferred_element_type=jnp.float32) + bq_ref[0]
    qh = jnp.transpose(q.astype(compute_dtype).reshape(tLq, H, D), (1, 0, 2))  # (H,tLq,D)

    # ---- flash-style online softmax over KV chunks (L-independent VMEM) ----
    m_sc[...] = jnp.full_like(m_sc, -jnp.inf)
    l_sc[...] = jnp.zeros_like(l_sc)
    acc_sc[...] = jnp.zeros_like(acc_sc)

    @pl.loop(0, nKv)
    def _kv_step(c):
        off = pl.multiple_of(c * tKv, tKv)
        k_c = k_sc[:, pl.ds(off, tKv), :]                         # (H, tKv, D)
        v_c = v_sc[:, pl.ds(off, tKv), :]
        s = jnp.einsum("hqd,hkd->hqk", qh, k_c,
                       preferred_element_type=jnp.float32)        # (H, tLq, tKv)
        m_prev = m_sc[...]
        m_new = jnp.maximum(m_prev, jnp.max(s, axis=-1, keepdims=True))
        alpha = jnp.exp(m_prev - m_new)
        p = jnp.exp(s - m_new)
        l_sc[...] = alpha * l_sc[...] + jnp.sum(p, axis=-1, keepdims=True)
        acc_sc[...] = alpha * acc_sc[...] + jnp.einsum(
            "hqk,hkd->hqd", p.astype(compute_dtype), v_c,
            preferred_element_type=jnp.float32)                   # (H, tLq, D)
        m_sc[...] = m_new

    # exact divide on the f32 path; approx EUP reciprocal only on bf16 path
    if compute_dtype == jnp.dtype(jnp.bfloat16):
        inv_l = pl.reciprocal(l_sc[...], approx=True)
    else:
        inv_l = 1.0 / l_sc[...]
    ah = (acc_sc[...] * inv_l).astype(compute_dtype)              # (H, tLq, D)
    attn = jnp.transpose(ah, (1, 0, 2)).reshape(tLq, E)

    attn = jnp.dot(attn, wo_ref[...],
                   preferred_element_type=jnp.float32) + bo_ref[0]
    x = x_q + attn                                                # residual 1

    # ---- x2 = LayerNorm2(x); MLP ----
    x2 = _layernorm(x, g2_ref[0], be2_ref[0])
    h1 = jnp.dot(x2.astype(compute_dtype), w1_ref[...],
                 preferred_element_type=jnp.float32) + b1_ref[0]
    h1 = _gelu_exact(h1)
    h2 = jnp.dot(h1.astype(compute_dtype), w2_ref[...],
                 preferred_element_type=jnp.float32) + b2_ref[0]

    o_ref[...] = (x + h2).astype(o_ref.dtype)                     # residual 2


def transformer_block(x, params, num_heads, *,
                      compute_dtype=jnp.bfloat16, q_block=256, kv_block=512):
    """x: (N, L, E) batch-first activations (transpose once if coming from
    PyTorch's default (L, N, E) MultiheadAttention layout).
    q_block: 256 suits v6e/v7x (2x256^2 MXU); use 128 on v5e."""
    N, L, E = x.shape
    H = num_heads
    D = E // H
    assert H * D == E, "embed_dim must be divisible by num_heads"
    # Tile sizes that evenly divide L (fall back to whole-sequence tiles),
    # keeping sublane counts multiples of 8 for unmasked stores.
    tLq = q_block if (L % q_block == 0) else L
    nLq = L // tLq
    tKv = kv_block if (L % kv_block == 0) else L
    scale = 1.0 / math.sqrt(D)
    cdt = jnp.dtype(compute_dtype)
    f32 = jnp.float32

    # Pre-cast MXU weight operands (halves weight DMA/VMEM in bf16 mode) and
    # fold the attention scale into wq/bq once, at parameter-prep time.
    param_list = [
        params["g1"].astype(f32), params["be1"].astype(f32),
        (params["wq"] * scale).astype(cdt), (params["bq"] * scale).astype(f32),
        params["wk"].astype(cdt), params["bk"].astype(f32),
        params["wv"].astype(cdt), params["bv"].astype(f32),
        params["wo"].astype(cdt), params["bo"].astype(f32),
        params["g2"].astype(f32), params["be2"].astype(f32),
        params["w1"].astype(cdt), params["b1"].astype(f32),
        params["w2"].astype(cdt), params["b2"].astype(f32),
    ]

    def _single_buffered(shape, index_map):
        # Block index never changes (weights) or only changes on the outer n
        # axis (x): single-buffer to save the double-buffer VMEM copy.
        try:
            return pl.BlockSpec(shape, index_map, pipeline_mode=pl.Buffered(1))
        except Exception:  # fallback if this JAX build lacks pipeline_mode
            return pl.BlockSpec(shape, index_map)

    in_specs = (
        [_single_buffered((None, L, E), lambda n, lq: (n, 0, 0))]     # x (full seq)
        + [_single_buffered(p.shape, lambda n, lq: (0, 0)) for p in param_list]
    )
    out_specs = pl.BlockSpec((None, tLq, E), lambda n, lq: (n, lq, 0))

    # Rough VMEM budget: resident weights + single-buffered x + double-buffered
    # output tile + K/V scratch (lane-padded) + flash scratch + softmax / MLP
    # intermediates.  Clamp to the physical VMEM of this chip minus headroom.
    lane = 128
    wbytes = sum(int(p.size) * p.dtype.itemsize for p in param_list)
    abytes = (L * E * 4
              + 2 * tLq * E * 4
              + 2 * H * L * max(D, lane) * cdt.itemsize
              + H * tLq * max(D, lane) * 4 + 2 * H * tLq * lane * 4
              + 3 * H * tLq * tKv * 4
              + 3 * tLq * 4 * E * 4)
    try:
        phys = int(pltpu.get_tpu_info().vmem_capacity_bytes)
    except Exception:
        phys = 64 * 1024 * 1024
    cap = max(phys - 16 * 1024 * 1024, 32 * 1024 * 1024)
    vmem_limit = int(min(max(32 * 1024 * 1024, 1.5 * (wbytes + abytes)), cap))

    cost = pl.CostEstimate(
        flops=int(2 * N * L * 12 * E * E + 4 * N * H * L * L * D),
        transcendentals=int(N * H * L * L + 4 * N * L * E + 2 * N * L),
        bytes_accessed=int(wbytes + 3 * N * L * E * 4),
    )

    kernel = partial(transformer_block_kernel,
                     num_heads=H, head_dim=D, kv_block=tKv, compute_dtype=cdt)

    return pl.pallas_call(
        kernel,
        out_shape=jax.ShapeDtypeStruct((N, L, E), x.dtype),
        grid_spec=pltpu.PrefetchScalarGridSpec(
            num_scalar_prefetch=0,
            grid=(N, nLq),
            in_specs=in_specs,
            out_specs=out_specs,
            scratch_shapes=[
                pltpu.VMEM((H, L, D), cdt),     # K, cached per batch element
                pltpu.VMEM((H, L, D), cdt),     # V
                pltpu.VMEM((H, tLq, 1), f32),   # running max
                pltpu.VMEM((H, tLq, 1), f32),   # running denominator
                pltpu.VMEM((H, tLq, D), f32),   # attention accumulator
            ],
        ),
        compiler_params=pltpu.CompilerParams(
            # n is embarrassingly parallel (megacore / 2-TC sharding); lq must
            # stay "arbitrary" since the K/V scratch written at lq == 0 is
            # reused by later Q-row tiles of the same batch element.
            dimension_semantics=("parallel", "arbitrary"),
            vmem_limit_bytes=vmem_limit,
        ),
        cost_estimate=cost,
    )(x, *param_list)


def _reference(x, params, num_heads):
    """Pure-JAX f32 reference (same math) for a correctness spot-check."""
    N, L, E = x.shape
    D = E // num_heads
    x2 = _layernorm(x, params["g1"], params["be1"])
    q = (x2 @ params["wq"] + params["bq"]).reshape(N, L, num_heads, D) / math.sqrt(D)
    k = (x2 @ params["wk"] + params["bk"]).reshape(N, L, num_heads, D)
    v = (x2 @ params["wv"] + params["bv"]).reshape(N, L, num_heads, D)
    s = jnp.einsum("nlhd,nmhd->nhlm", q, k)
    p = jax.nn.softmax(s, axis=-1)
    a = jnp.einsum("nhlm,nmhd->nlhd", p, v).reshape(N, L, E)
    x = x + a @ params["wo"] + params["bo"]
    x2 = _layernorm(x, params["g2"], params["be2"])
    h = _gelu_exact(x2 @ params["w1"] + params["b1"])
    return x + h @ params["w2"] + params["b2"]


def make_params(key, embed_dim):
    # Corresponds to PyTorch MHA's in_proj_weight split into q/k/v (transposed
    # to (in, out)), out_proj, and the two MLP Linears (also transposed).
    E = embed_dim
    ks = jax.random.split(key, 12)
    n = lambda k, shape, s=0.02: (s * jax.random.normal(k, shape)).astype(jnp.float32)
    return {
        "g1": jnp.ones((1, E), jnp.float32), "be1": jnp.zeros((1, E), jnp.float32),
        "wq": n(ks[0], (E, E)), "bq": n(ks[1], (1, E)),
        "wk": n(ks[2], (E, E)), "bk": n(ks[3], (1, E)),
        "wv": n(ks[4], (E, E)), "bv": n(ks[5], (1, E)),
        "wo": n(ks[6], (E, E)), "bo": n(ks[7], (1, E)),
        "g2": jnp.ones((1, E), jnp.float32), "be2": jnp.zeros((1, E), jnp.float32),
        "w1": n(ks[8], (E, 4 * E)), "b1": n(ks[9], (1, 4 * E)),
        "w2": n(ks[10], (4 * E, E)), "b2": n(ks[11], (1, E)),
    }


if __name__ == "__main__":
    # Small shapes: batch=2, seq=8, embed=32, heads=4 (head_dim=8), batch-first.
    N, L, E, H = 2, 8, 32, 4
    key = jax.random.PRNGKey(0)
    kx, kp = jax.random.split(key)
    x = jax.random.normal(kx, (N, L, E), dtype=jnp.float32)
    params = make_params(kp, E)

    ref = _reference(x, params, H)

    # f32 MXU path: tight check against the pure-JAX reference.
    out_f32 = jax.block_until_ready(transformer_block(x, params, H,
                                                      compute_dtype=jnp.float32))
    assert out_f32.shape == (N, L, E)
    assert jnp.allclose(out_f32, ref, atol=5e-4, rtol=5e-4), "f32 path mismatch"

    # bf16 MXU path (production default): looser tolerance.
    out_bf16 = jax.block_until_ready(transformer_block(x, params, H,
                                                       compute_dtype=jnp.bfloat16))
    assert jnp.allclose(out_bf16, ref, atol=2e-2, rtol=2e-2), "bf16 path mismatch"

    print("KERNEL_OK")
</pallas_src>

<mosaic_0001>
module attributes {stable_mosaic.version = 11 : i64} {
  func.func @transformer_block_kernel(%arg0: i32, %arg1: i32, %arg2: memref<1x8x32xf32, #tpu.memory_space<vmem>>, %arg3: memref<1x32xf32, #tpu.memory_space<vmem>>, %arg4: memref<1x32xf32, #tpu.memory_space<vmem>>, %arg5: memref<32x32xf32, #tpu.memory_space<vmem>>, %arg6: memref<1x32xf32, #tpu.memory_space<vmem>>, %arg7: memref<32x32xf32, #tpu.memory_space<vmem>>, %arg8: memref<1x32xf32, #tpu.memory_space<vmem>>, %arg9: memref<32x32xf32, #tpu.memory_space<vmem>>, %arg10: memref<1x32xf32, #tpu.memory_space<vmem>>, %arg11: memref<32x32xf32, #tpu.memory_space<vmem>>, %arg12: memref<1x32xf32, #tpu.memory_space<vmem>>, %arg13: memref<1x32xf32, #tpu.memory_space<vmem>>, %arg14: memref<1x32xf32, #tpu.memory_space<vmem>>, %arg15: memref<32x128xf32, #tpu.memory_space<vmem>>, %arg16: memref<1x128xf32, #tpu.memory_space<vmem>>, %arg17: memref<128x32xf32, #tpu.memory_space<vmem>>, %arg18: memref<1x32xf32, #tpu.memory_space<vmem>>, %arg19: memref<1x8x32xf32, #tpu.memory_space<vmem>>, %arg20: memref<4x8x8xf32, #tpu.memory_space<vmem>>, %arg21: memref<4x8x8xf32, #tpu.memory_space<vmem>>, %arg22: memref<4x8x1xf32, #tpu.memory_space<vmem>>, %arg23: memref<4x8x1xf32, #tpu.memory_space<vmem>>, %arg24: memref<4x8x8xf32, #tpu.memory_space<vmem>>) attributes {dimension_semantics = [#tpu.dimension_semantics<parallel>, #tpu.dimension_semantics<arbitrary>], iteration_bounds = array<i64: 2, 1>, scalar_prefetch = 0 : i64, scratch_operands = 5 : i64, tpu.core_type = #tpu.core_type<tc>, window_params = [{pipeline_mode = #tpu.pipeline_mode<synchronous>, transform_indices = @transform_0, window_bounds = array<i64: 1, 8, 32>}, {pipeline_mode = #tpu.pipeline_mode<synchronous>, transform_indices = @transform_1, window_bounds = array<i64: 1, 32>}, {pipeline_mode = #tpu.pipeline_mode<synchronous>, transform_indices = @transform_2, window_bounds = array<i64: 1, 32>}, {pipeline_mode = #tpu.pipeline_mode<synchronous>, transform_indices = @transform_3, window_bounds = array<i64: 32, 32>}, {pipeline_mode = #tpu.pipeline_mode<synchronous>, transform_indices = @transform_4, window_bounds = array<i64: 1, 32>}, {pipeline_mode = #tpu.pipeline_mode<synchronous>, transform_indices = @transform_5, window_bounds = array<i64: 32, 32>}, {pipeline_mode = #tpu.pipeline_mode<synchronous>, transform_indices = @transform_6, window_bounds = array<i64: 1, 32>}, {pipeline_mode = #tpu.pipeline_mode<synchronous>, transform_indices = @transform_7, window_bounds = array<i64: 32, 32>}, {pipeline_mode = #tpu.pipeline_mode<synchronous>, transform_indices = @transform_8, window_bounds = array<i64: 1, 32>}, {pipeline_mode = #tpu.pipeline_mode<synchronous>, transform_indices = @transform_9, window_bounds = array<i64: 32, 32>}, {pipeline_mode = #tpu.pipeline_mode<synchronous>, transform_indices = @transform_10, window_bounds = array<i64: 1, 32>}, {pipeline_mode = #tpu.pipeline_mode<synchronous>, transform_indices = @transform_11, window_bounds = array<i64: 1, 32>}, {pipeline_mode = #tpu.pipeline_mode<synchronous>, transform_indices = @transform_12, window_bounds = array<i64: 1, 32>}, {pipeline_mode = #tpu.pipeline_mode<synchronous>, transform_indices = @transform_13, window_bounds = array<i64: 32, 128>}, {pipeline_mode = #tpu.pipeline_mode<synchronous>, transform_indices = @transform_14, window_bounds = array<i64: 1, 128>}, {pipeline_mode = #tpu.pipeline_mode<synchronous>, transform_indices = @transform_15, window_bounds = array<i64: 128, 32>}, {pipeline_mode = #tpu.pipeline_mode<synchronous>, transform_indices = @transform_16, window_bounds = array<i64: 1, 32>}, {transform_indices = @transform_17, window_bounds = array<i64: 1, 8, 32>}]} {
    %c0_i32 = arith.constant 0 : i32
    %0 = arith.cmpi eq, %arg1, %c0_i32 : i32
    %1 = arith.extui %0 : i1 to i32
    %c0_i32_0 = arith.constant 0 : i32
    %2 = arith.cmpi ne, %1, %c0_i32_0 : i32
    scf.if %2 {
      %c0_94 = arith.constant 0 : index
      %c0_95 = arith.constant 0 : index
      %c0_96 = arith.constant 0 : index
      %152 = vector.load %arg2[%c0_94, %c0_95, %c0_96] : memref<1x8x32xf32, #tpu.memory_space<vmem>>, vector<1x8x32xf32>
      %153 = vector.shape_cast %152 : vector<1x8x32xf32> to vector<8x32xf32>
      %c0_97 = arith.constant 0 : index
      %c0_98 = arith.constant 0 : index
      %154 = vector.load %arg3[%c0_97, %c0_98] : memref<1x32xf32, #tpu.memory_space<vmem>>, vector<1x32xf32>
      %155 = vector.shape_cast %154 : vector<1x32xf32> to vector<32xf32>
      %c0_99 = arith.constant 0 : index
      %c0_100 = arith.constant 0 : index
      %156 = vector.load %arg4[%c0_99, %c0_100] : memref<1x32xf32, #tpu.memory_space<vmem>>, vector<1x32xf32>
      %157 = vector.shape_cast %156 : vector<1x32xf32> to vector<32xf32>
      %cst_101 = arith.constant dense<0.000000e+00> : vector<8xf32>
      %158 = vector.multi_reduction <add>, %153, %cst_101 [1] : vector<8x32xf32> to vector<8xf32>
      %159 = vector.shape_cast %158 : vector<8xf32> to vector<8x1xf32>
      %cst_102 = arith.constant 3.200000e+01 : f32
      %160 = vector.broadcast %cst_102 : f32 to vector<8x1xf32>
      %161 = arith.divf %159, %160 : vector<8x1xf32>
      %162 = vector.broadcast %161 : vector<8x1xf32> to vector<8x32xf32>
      %163 = arith.subf %153, %162 : vector<8x32xf32>
      %164 = arith.mulf %163, %163 : vector<8x32xf32>
      %cst_103 = arith.constant dense<0.000000e+00> : vector<8xf32>
      %165 = vector.multi_reduction <add>, %164, %cst_103 [1] : vector<8x32xf32> to vector<8xf32>
      %166 = vector.shape_cast %165 : vector<8xf32> to vector<8x1xf32>
      %cst_104 = arith.constant 3.200000e+01 : f32
      %167 = vector.broadcast %cst_104 : f32 to vector<8x1xf32>
      %168 = arith.divf %166, %167 : vector<8x1xf32>
      %169 = vector.broadcast %161 : vector<8x1xf32> to vector<8x32xf32>
      %170 = arith.subf %153, %169 : vector<8x32xf32>
      %cst_105 = arith.constant 9.99999997E-7 : f32
      %171 = vector.broadcast %cst_105 : f32 to vector<8x1xf32>
      %172 = arith.addf %168, %171 : vector<8x1xf32>
      %173 = math.rsqrt %172 : vector<8x1xf32>
      %174 = vector.broadcast %173 : vector<8x1xf32> to vector<8x32xf32>
      %175 = arith.mulf %170, %174 : vector<8x32xf32>
      %176 = vector.shape_cast %155 : vector<32xf32> to vector<1x32xf32>
      %177 = vector.broadcast %176 : vector<1x32xf32> to vector<8x32xf32>
      %178 = arith.mulf %175, %177 : vector<8x32xf32>
      %179 = vector.shape_cast %157 : vector<32xf32> to vector<1x32xf32>
      %180 = vector.broadcast %179 : vector<1x32xf32> to vector<8x32xf32>
      %181 = arith.addf %178, %180 : vector<8x32xf32>
      %c0_106 = arith.constant 0 : index
      %c0_107 = arith.constant 0 : index
      %182 = vector.load %arg7[%c0_106, %c0_107] : memref<32x32xf32, #tpu.memory_space<vmem>>, vector<32x32xf32>
      %cst_108 = arith.constant dense<0.000000e+00> : vector<8x32xf32>
      %183 = tpu.matmul %181, %182, %cst_108 {dimension_numbers = #tpu.dot_dimension_numbers<[1], [0], [0], [1], [0, 0, 1, 1], [], []>} : vector<8x32xf32>, vector<32x32xf32>, vector<8x32xf32> -> vector<8x32xf32>
      %c0_109 = arith.constant 0 : index
      %c0_110 = arith.constant 0 : index
      %184 = vector.load %arg8[%c0_109, %c0_110] : memref<1x32xf32, #tpu.memory_space<vmem>>, vector<1x32xf32>
      %185 = vector.shape_cast %184 : vector<1x32xf32> to vector<32xf32>
      %186 = vector.shape_cast %185 : vector<32xf32> to vector<1x32xf32>
      %187 = vector.broadcast %186 : vector<1x32xf32> to vector<8x32xf32>
      %188 = arith.addf %183, %187 : vector<8x32xf32>
      %c0_111 = arith.constant 0 : index
      %c0_112 = arith.constant 0 : index
      %189 = vector.load %arg9[%c0_111, %c0_112] : memref<32x32xf32, #tpu.memory_space<vmem>>, vector<32x32xf32>
      %cst_113 = arith.constant dense<0.000000e+00> : vector<8x32xf32>
      %190 = tpu.matmul %181, %189, %cst_113 {dimension_numbers = #tpu.dot_dimension_numbers<[1], [0], [0], [1], [0, 0, 1, 1], [], []>} : vector<8x32xf32>, vector<32x32xf32>, vector<8x32xf32> -> vector<8x32xf32>
      %c0_114 = arith.constant 0 : index
      %c0_115 = arith.constant 0 : index
      %191 = vector.load %arg10[%c0_114, %c0_115] : memref<1x32xf32, #tpu.memory_space<vmem>>, vector<1x32xf32>
      %192 = vector.shape_cast %191 : vector<1x32xf32> to vector<32xf32>
      %193 = vector.shape_cast %192 : vector<32xf32> to vector<1x32xf32>
      %194 = vector.broadcast %193 : vector<1x32xf32> to vector<8x32xf32>
      %195 = arith.addf %190, %194 : vector<8x32xf32>
      %196 = vector.shape_cast %188 : vector<8x32xf32> to vector<8x4x8xf32>
      %197 = tpu.transpose %196, [1, 0, 2] : vector<8x4x8xf32> -> vector<4x8x8xf32>
      %c0_116 = arith.constant 0 : index
      %c0_117 = arith.constant 0 : index
      %c0_118 = arith.constant 0 : index
      %198 = vector.load %arg20[%c0_116, %c0_117, %c0_118] : memref<4x8x8xf32, #tpu.memory_space<vmem>>, vector<4x8x8xf32>
      tpu.vector_store %arg20[%c0_116, %c0_117, %c0_118], %197 {strides = array<i32>} : memref<4x8x8xf32, #tpu.memory_space<vmem>>, vector<4x8x8xf32>,
      %199 = vector.shape_cast %195 : vector<8x32xf32> to vector<8x4x8xf32>
      %200 = tpu.transpose %199, [1, 0, 2] : vector<8x4x8xf32> -> vector<4x8x8xf32>
      %c0_119 = arith.constant 0 : index
      %c0_120 = arith.constant 0 : index
      %c0_121 = arith.constant 0 : index
      %201 = vector.load %arg21[%c0_119, %c0_120, %c0_121] : memref<4x8x8xf32, #tpu.memory_space<vmem>>, vector<4x8x8xf32>
      tpu.vector_store %arg21[%c0_119, %c0_120, %c0_121], %200 {strides = array<i32>} : memref<4x8x8xf32, #tpu.memory_space<vmem>>, vector<4x8x8xf32>,
    } else {
    }
    %c8_i32 = arith.constant 8 : i32
    %3 = arith.muli %arg1, %c8_i32 : i32
    %4 = tpu.assume_multiple %3, 8 : i32
    %c0 = arith.constant 0 : index
    %5 = arith.index_cast %4 : i32 to index
    %c0_1 = arith.constant 0 : index
    %6 = vector.load %arg2[%c0, %5, %c0_1] : memref<1x8x32xf32, #tpu.memory_space<vmem>>, vector<1x8x32xf32>
    %7 = vector.shape_cast %6 : vector<1x8x32xf32> to vector<8x32xf32>
    %c0_2 = arith.constant 0 : index
    %c0_3 = arith.constant 0 : index
    %8 = vector.load %arg3[%c0_2, %c0_3] : memref<1x32xf32, #tpu.memory_space<vmem>>, vector<1x32xf32>
    %9 = vector.shape_cast %8 : vector<1x32xf32> to vector<32xf32>
    %c0_4 = arith.constant 0 : index
    %c0_5 = arith.constant 0 : index
    %10 = vector.load %arg4[%c0_4, %c0_5] : memref<1x32xf32, #tpu.memory_space<vmem>>, vector<1x32xf32>
    %11 = vector.shape_cast %10 : vector<1x32xf32> to vector<32xf32>
    %cst = arith.constant dense<0.000000e+00> : vector<8xf32>
    %12 = vector.multi_reduction <add>, %7, %cst [1] : vector<8x32xf32> to vector<8xf32>
    %13 = vector.shape_cast %12 : vector<8xf32> to vector<8x1xf32>
    %cst_6 = arith.constant 3.200000e+01 : f32
    %14 = vector.broadcast %cst_6 : f32 to vector<8x1xf32>
    %15 = arith.divf %13, %14 : vector<8x1xf32>
    %16 = vector.broadcast %15 : vector<8x1xf32> to vector<8x32xf32>
    %17 = arith.subf %7, %16 : vector<8x32xf32>
    %18 = arith.mulf %17, %17 : vector<8x32xf32>
    %cst_7 = arith.constant dense<0.000000e+00> : vector<8xf32>
    %19 = vector.multi_reduction <add>, %18, %cst_7 [1] : vector<8x32xf32> to vector<8xf32>
    %20 = vector.shape_cast %19 : vector<8xf32> to vector<8x1xf32>
    %cst_8 = arith.constant 3.200000e+01 : f32
    %21 = vector.broadcast %cst_8 : f32 to vector<8x1xf32>
    %22 = arith.divf %20, %21 : vector<8x1xf32>
    %23 = vector.broadcast %15 : vector<8x1xf32> to vector<8x32xf32>
    %24 = arith.subf %7, %23 : vector<8x32xf32>
    %cst_9 = arith.constant 9.99999997E-7 : f32
    %25 = vector.broadcast %cst_9 : f32 to vector<8x1xf32>
    %26 = arith.addf %22, %25 : vector<8x1xf32>
    %27 = math.rsqrt %26 : vector<8x1xf32>
    %28 = vector.broadcast %27 : vector<8x1xf32> to vector<8x32xf32>
    %29 = arith.mulf %24, %28 : vector<8x32xf32>
    %30 = vector.shape_cast %9 : vector<32xf32> to vector<1x32xf32>
    %31 = vector.broadcast %30 : vector<1x32xf32> to vector<8x32xf32>
    %32 = arith.mulf %29, %31 : vector<8x32xf32>
    %33 = vector.shape_cast %11 : vector<32xf32> to vector<1x32xf32>
    %34 = vector.broadcast %33 : vector<1x32xf32> to vector<8x32xf32>
    %35 = arith.addf %32, %34 : vector<8x32xf32>
    %c0_10 = arith.constant 0 : index
    %c0_11 = arith.constant 0 : index
    %36 = vector.load %arg5[%c0_10, %c0_11] : memref<32x32xf32, #tpu.memory_space<vmem>>, vector<32x32xf32>
    %cst_12 = arith.constant dense<0.000000e+00> : vector<8x32xf32>
    %37 = tpu.matmul %35, %36, %cst_12 {dimension_numbers = #tpu.dot_dimension_numbers<[1], [0], [0], [1], [0, 0, 1, 1], [], []>} : vector<8x32xf32>, vector<32x32xf32>, vector<8x32xf32> -> vector<8x32xf32>
    %c0_13 = arith.constant 0 : index
    %c0_14 = arith.constant 0 : index
    %38 = vector.load %arg6[%c0_13, %c0_14] : memref<1x32xf32, #tpu.memory_space<vmem>>, vector<1x32xf32>
    %39 = vector.shape_cast %38 : vector<1x32xf32> to vector<32xf32>
    %40 = vector.shape_cast %39 : vector<32xf32> to vector<1x32xf32>
    %41 = vector.broadcast %40 : vector<1x32xf32> to vector<8x32xf32>
    %42 = arith.addf %37, %41 : vector<8x32xf32>
    %43 = vector.shape_cast %42 : vector<8x32xf32> to vector<8x4x8xf32>
    %44 = tpu.transpose %43, [1, 0, 2] : vector<8x4x8xf32> -> vector<4x8x8xf32>
    %cst_15 = arith.constant 0xFF800000 : f32
    %45 = vector.broadcast %cst_15 : f32 to vector<4x8x1xf32>
    %c0_16 = arith.constant 0 : index
    %c0_17 = arith.constant 0 : index
    %c0_18 = arith.constant 0 : index
    %46 = vector.load %arg22[%c0_16, %c0_17, %c0_18] : memref<4x8x1xf32, #tpu.memory_space<vmem>>, vector<4x8x1xf32>
    tpu.vector_store %arg22[%c0_16, %c0_17, %c0_18], %45 {strides = array<i32>} : memref<4x8x1xf32, #tpu.memory_space<vmem>>, vector<4x8x1xf32>,
    %cst_19 = arith.constant 0.000000e+00 : f32
    %47 = vector.broadcast %cst_19 : f32 to vector<4x8x1xf32>
    %c0_20 = arith.constant 0 : index
    %c0_21 = arith.constant 0 : index
    %c0_22 = arith.constant 0 : index
    %48 = vector.load %arg23[%c0_20, %c0_21, %c0_22] : memref<4x8x1xf32, #tpu.memory_space<vmem>>, vector<4x8x1xf32>
    tpu.vector_store %arg23[%c0_20, %c0_21, %c0_22], %47 {strides = array<i32>} : memref<4x8x1xf32, #tpu.memory_space<vmem>>, vector<4x8x1xf32>,
    %cst_23 = arith.constant 0.000000e+00 : f32
    %49 = vector.broadcast %cst_23 : f32 to vector<4x8x8xf32>
    %c0_24 = arith.constant 0 : index
    %c0_25 = arith.constant 0 : index
    %c0_26 = arith.constant 0 : index
    %50 = vector.load %arg24[%c0_24, %c0_25, %c0_26] : memref<4x8x8xf32, #tpu.memory_space<vmem>>, vector<4x8x8xf32>
    tpu.vector_store %arg24[%c0_24, %c0_25, %c0_26], %49 {strides = array<i32>} : memref<4x8x8xf32, #tpu.memory_space<vmem>>, vector<4x8x8xf32>,
    %c0_i32_27 = arith.constant 0 : i32
    %c1_i32 = arith.constant 1 : i32
    %51 = arith.muli %c0_i32_27, %c1_i32 : i32
    %c0_i32_28 = arith.constant 0 : i32
    %52 = arith.addi %c0_i32_28, %51 : i32
    %c8_i32_29 = arith.constant 8 : i32
    %53 = arith.muli %52, %c8_i32_29 : i32
    %54 = tpu.assume_multiple %53, 8 : i32
    %c0_30 = arith.constant 0 : index
    %55 = arith.index_cast %54 : i32 to index
    %c0_31 = arith.constant 0 : index
    %56 = vector.load %arg20[%c0_30, %55, %c0_31] : memref<4x8x8xf32, #tpu.memory_space<vmem>>, vector<4x8x8xf32>
    %c0_32 = arith.constant 0 : index
    %57 = arith.index_cast %54 : i32 to index
    %c0_33 = arith.constant 0 : index
    %58 = vector.load %arg21[%c0_32, %57, %c0_33] : memref<4x8x8xf32, #tpu.memory_space<vmem>>, vector<4x8x8xf32>
    "tpu.trace_start"() <{level = 10 : i32, message = "hqd,hkd->hqk"}> : () -> ()
    %cst_34 = arith.constant dense<0.000000e+00> : vector<4x8x8xf32>
    %59 = tpu.matmul %44, %56, %cst_34 {dimension_numbers = #tpu.dot_dimension_numbers<[2], [2], [1], [1], [0, 0, 0, 1, 1, 1], [0], [0]>} : vector<4x8x8xf32>, vector<4x8x8xf32>, vector<4x8x8xf32> -> vector<4x8x8xf32>
    "tpu.trace_stop"() : () -> ()
    %c0_35 = arith.constant 0 : index
    %c0_36 = arith.constant 0 : index
    %c0_37 = arith.constant 0 : index
    %60 = vector.load %arg22[%c0_35, %c0_36, %c0_37] : memref<4x8x1xf32, #tpu.memory_space<vmem>>, vector<4x8x1xf32>
    %cst_38 = arith.constant dense<0xFF800000> : vector<4x8xf32>
    %61 = vector.multi_reduction <maximumf>, %59, %cst_38 [2] : vector<4x8x8xf32> to vector<4x8xf32>
    %62 = vector.shape_cast %61 : vector<4x8xf32> to vector<4x8x1xf32>
    %63 = arith.maximumf %60, %62 : vector<4x8x1xf32>
    %64 = arith.subf %60, %63 : vector<4x8x1xf32>
    %65 = math.exp %64 : vector<4x8x1xf32>
    %66 = vector.broadcast %63 : vector<4x8x1xf32> to vector<4x8x8xf32>
    %67 = arith.subf %59, %66 : vector<4x8x8xf32>
    %68 = math.exp %67 : vector<4x8x8xf32>
    %c0_39 = arith.constant 0 : index
    %c0_40 = arith.constant 0 : index
    %c0_41 = arith.constant 0 : index
    %69 = vector.load %arg23[%c0_39, %c0_40, %c0_41] : memref<4x8x1xf32, #tpu.memory_space<vmem>>, vector<4x8x1xf32>
    %70 = arith.mulf %65, %69 : vector<4x8x1xf32>
    %cst_42 = arith.constant dense<0.000000e+00> : vector<4x8xf32>
    %71 = vector.multi_reduction <add>, %68, %cst_42 [2] : vector<4x8x8xf32> to vector<4x8xf32>
    %72 = vector.shape_cast %71 : vector<4x8xf32> to vector<4x8x1xf32>
    %73 = arith.addf %70, %72 : vector<4x8x1xf32>
    %c0_43 = arith.constant 0 : index
    %c0_44 = arith.constant 0 : index
    %c0_45 = arith.constant 0 : index
    %74 = vector.load %arg23[%c0_43, %c0_44, %c0_45] : memref<4x8x1xf32, #tpu.memory_space<vmem>>, vector<4x8x1xf32>
    tpu.vector_store %arg23[%c0_43, %c0_44, %c0_45], %73 {strides = array<i32>} : memref<4x8x1xf32, #tpu.memory_space<vmem>>, vector<4x8x1xf32>,
    %c0_46 = arith.constant 0 : index
    %c0_47 = arith.constant 0 : index
    %c0_48 = arith.constant 0 : index
    %75 = vector.load %arg24[%c0_46, %c0_47, %c0_48] : memref<4x8x8xf32, #tpu.memory_space<vmem>>, vector<4x8x8xf32>
    %76 = vector.broadcast %65 : vector<4x8x1xf32> to vector<4x8x8xf32>
    %77 = arith.mulf %76, %75 : vector<4x8x8xf32>
    "tpu.trace_start"() <{level = 10 : i32, message = "hqk,hkd->hqd"}> : () -> ()
    %cst_49 = arith.constant dense<0.000000e+00> : vector<4x8x8xf32>
    %78 = tpu.matmul %68, %58, %cst_49 {dimension_numbers = #tpu.dot_dimension_numbers<[2], [1], [1], [2], [0, 0, 0, 1, 1, 2], [0], [0]>} : vector<4x8x8xf32>, vector<4x8x8xf32>, vector<4x8x8xf32> -> vector<4x8x8xf32>
    "tpu.trace_stop"() : () -> ()
    %79 = arith.addf %77, %78 : vector<4x8x8xf32>
    %c0_50 = arith.constant 0 : index
    %c0_51 = arith.constant 0 : index
    %c0_52 = arith.constant 0 : index
    %80 = vector.load %arg24[%c0_50, %c0_51, %c0_52] : memref<4x8x8xf32, #tpu.memory_space<vmem>>, vector<4x8x8xf32>
    tpu.vector_store %arg24[%c0_50, %c0_51, %c0_52], %79 {strides = array<i32>} : memref<4x8x8xf32, #tpu.memory_space<vmem>>, vector<4x8x8xf32>,
    %c0_53 = arith.constant 0 : index
    %c0_54 = arith.constant 0 : index
    %c0_55 = arith.constant 0 : index
    %81 = vector.load %arg22[%c0_53, %c0_54, %c0_55] : memref<4x8x1xf32, #tpu.memory_space<vmem>>, vector<4x8x1xf32>
    tpu.vector_store %arg22[%c0_53, %c0_54, %c0_55], %63 {strides = array<i32>} : memref<4x8x1xf32, #tpu.memory_space<vmem>>, vector<4x8x1xf32>,
    %c1_i32_56 = arith.constant 1 : i32
    %c0_57 = arith.constant 0 : index
    %c0_58 = arith.constant 0 : index
    %c0_59 = arith.constant 0 : index
    %82 = vector.load %arg23[%c0_57, %c0_58, %c0_59] : memref<4x8x1xf32, #tpu.memory_space<vmem>>, vector<4x8x1xf32>
    %cst_60 = arith.constant 1.000000e+00 : f32
    %83 = vector.broadcast %cst_60 : f32 to vector<4x8x1xf32>
    %84 = arith.divf %83, %82 : vector<4x8x1xf32>
    %c0_61 = arith.constant 0 : index
    %c0_62 = arith.constant 0 : index
    %c0_63 = arith.constant 0 : index
    %85 = vector.load %arg24[%c0_61, %c0_62, %c0_63] : memref<4x8x8xf32, #tpu.memory_space<vmem>>, vector<4x8x8xf32>
    %86 = vector.broadcast %84 : vector<4x8x1xf32> to vector<4x8x8xf32>
    %87 = arith.mulf %85, %86 : vector<4x8x8xf32>
    %88 = tpu.transpose %87, [1, 0, 2] : vector<4x8x8xf32> -> vector<8x4x8xf32>
    %89 = vector.shape_cast %88 : vector<8x4x8xf32> to vector<8x32xf32>
    %c0_64 = arith.constant 0 : index
    %c0_65 = arith.constant 0 : index
    %90 = vector.load %arg11[%c0_64, %c0_65] : memref<32x32xf32, #tpu.memory_space<vmem>>, vector<32x32xf32>
    %cst_66 = arith.constant dense<0.000000e+00> : vector<8x32xf32>
    %91 = tpu.matmul %89, %90, %cst_66 {dimension_numbers = #tpu.dot_dimension_numbers<[1], [0], [0], [1], [0, 0, 1, 1], [], []>} : vector<8x32xf32>, vector<32x32xf32>, vector<8x32xf32> -> vector<8x32xf32>
    %c0_67 = arith.constant 0 : index
    %c0_68 = arith.constant 0 : index
    %92 = vector.load %arg12[%c0_67, %c0_68] : memref<1x32xf32, #tpu.memory_space<vmem>>, vector<1x32xf32>
    %93 = vector.shape_cast %92 : vector<1x32xf32> to vector<32xf32>
    %94 = vector.shape_cast %93 : vector<32xf32> to vector<1x32xf32>
    %95 = vector.broadcast %94 : vector<1x32xf32> to vector<8x32xf32>
    %96 = arith.addf %91, %95 : vector<8x32xf32>
    %97 = arith.addf %7, %96 : vector<8x32xf32>
    %c0_69 = arith.constant 0 : index
    %c0_70 = arith.constant 0 : index
    %98 = vector.load %arg13[%c0_69, %c0_70] : memref<1x32xf32, #tpu.memory_space<vmem>>, vector<1x32xf32>
    %99 = vector.shape_cast %98 : vector<1x32xf32> to vector<32xf32>
    %c0_71 = arith.constant 0 : index
    %c0_72 = arith.constant 0 : index
    %100 = vector.load %arg14[%c0_71, %c0_72] : memref<1x32xf32, #tpu.memory_space<vmem>>, vector<1x32xf32>
    %101 = vector.shape_cast %100 : vector<1x32xf32> to vector<32xf32>
    %cst_73 = arith.constant dense<0.000000e+00> : vector<8xf32>
    %102 = vector.multi_reduction <add>, %97, %cst_73 [1] : vector<8x32xf32> to vector<8xf32>
    %103 = vector.shape_cast %102 : vector<8xf32> to vector<8x1xf32>
    %cst_74 = arith.constant 3.200000e+01 : f32
    %104 = vector.broadcast %cst_74 : f32 to vector<8x1xf32>
    %105 = arith.divf %103, %104 : vector<8x1xf32>
    %106 = vector.broadcast %105 : vector<8x1xf32> to vector<8x32xf32>
    %107 = arith.subf %97, %106 : vector<8x32xf32>
    %108 = arith.mulf %107, %107 : vector<8x32xf32>
    %cst_75 = arith.constant dense<0.000000e+00> : vector<8xf32>
    %109 = vector.multi_reduction <add>, %108, %cst_75 [1] : vector<8x32xf32> to vector<8xf32>
    %110 = vector.shape_cast %109 : vector<8xf32> to vector<8x1xf32>
    %cst_76 = arith.constant 3.200000e+01 : f32
    %111 = vector.broadcast %cst_76 : f32 to vector<8x1xf32>
    %112 = arith.divf %110, %111 : vector<8x1xf32>
    %113 = vector.broadcast %105 : vector<8x1xf32> to vector<8x32xf32>
    %114 = arith.subf %97, %113 : vector<8x32xf32>
    %cst_77 = arith.constant 9.99999997E-7 : f32
    %115 = vector.broadcast %cst_77 : f32 to vector<8x1xf32>
    %116 = arith.addf %112, %115 : vector<8x1xf32>
    %117 = math.rsqrt %116 : vector<8x1xf32>
    %118 = vector.broadcast %117 : vector<8x1xf32> to vector<8x32xf32>
    %119 = arith.mulf %114, %118 : vector<8x32xf32>
    %120 = vector.shape_cast %99 : vector<32xf32> to vector<1x32xf32>
    %121 = vector.broadcast %120 : vector<1x32xf32> to vector<8x32xf32>
    %122 = arith.mulf %119, %121 : vector<8x32xf32>
    %123 = vector.shape_cast %101 : vector<32xf32> to vector<1x32xf32>
    %124 = vector.broadcast %123 : vector<1x32xf32> to vector<8x32xf32>
    %125 = arith.addf %122, %124 : vector<8x32xf32>
    %c0_78 = arith.constant 0 : index
    %c0_79 = arith.constant 0 : index
    %126 = vector.load %arg15[%c0_78, %c0_79] : memref<32x128xf32, #tpu.memory_space<vmem>>, vector<32x128xf32>
    %cst_80 = arith.constant dense<0.000000e+00> : vector<8x128xf32>
    %127 = tpu.matmul %125, %126, %cst_80 {dimension_numbers = #tpu.dot_dimension_numbers<[1], [0], [0], [1], [0, 0, 1, 1], [], []>} : vector<8x32xf32>, vector<32x128xf32>, vector<8x128xf32> -> vector<8x128xf32>
    %c0_81 = arith.constant 0 : index
    %c0_82 = arith.constant 0 : index
    %128 = vector.load %arg16[%c0_81, %c0_82] : memref<1x128xf32, #tpu.memory_space<vmem>>, vector<1x128xf32>
    %129 = vector.shape_cast %128 : vector<1x128xf32> to vector<128xf32>
    %130 = vector.shape_cast %129 : vector<128xf32> to vector<1x128xf32>
    %131 = vector.broadcast %130 : vector<1x128xf32> to vector<8x128xf32>
    %132 = arith.addf %127, %131 : vector<8x128xf32>
    %cst_83 = arith.constant 5.000000e-01 : f32
    %133 = vector.broadcast %cst_83 : f32 to vector<8x128xf32>
    %134 = arith.mulf %133, %132 : vector<8x128xf32>
    %cst_84 = arith.constant 0.707106769 : f32
    %135 = vector.broadcast %cst_84 : f32 to vector<8x128xf32>
    %136 = arith.mulf %132, %135 : vector<8x128xf32>
    %137 = math.erf %136 : vector<8x128xf32>
    %cst_85 = arith.constant 1.000000e+00 : f32
    %138 = vector.broadcast %cst_85 : f32 to vector<8x128xf32>
    %139 = arith.addf %138, %137 : vector<8x128xf32>
    %140 = arith.mulf %134, %139 : vector<8x128xf32>
    %c0_86 = arith.constant 0 : index
    %c0_87 = arith.constant 0 : index
    %141 = vector.load %arg17[%c0_86, %c0_87] : memref<128x32xf32, #tpu.memory_space<vmem>>, vector<128x32xf32>
    %cst_88 = arith.constant dense<0.000000e+00> : vector<8x32xf32>
    %142 = tpu.matmul %140, %141, %cst_88 {dimension_numbers = #tpu.dot_dimension_numbers<[1], [0], [0], [1], [0, 0, 1, 1], [], []>} : vector<8x128xf32>, vector<128x32xf32>, vector<8x32xf32> -> vector<8x32xf32>
    %c0_89 = arith.constant 0 : index
    %c0_90 = arith.constant 0 : index
    %143 = vector.load %arg18[%c0_89, %c0_90] : memref<1x32xf32, #tpu.memory_space<vmem>>, vector<1x32xf32>
    %144 = vector.shape_cast %143 : vector<1x32xf32> to vector<32xf32>
    %145 = vector.shape_cast %144 : vector<32xf32> to vector<1x32xf32>
    %146 = vector.broadcast %145 : vector<1x32xf32> to vector<8x32xf32>
    %147 = arith.addf %142, %146 : vector<8x32xf32>
    %148 = arith.addf %97, %147 : vector<8x32xf32>
    %c0_91 = arith.constant 0 : index
    %c0_92 = arith.constant 0 : index
    %c0_93 = arith.constant 0 : index
    %149 = vector.load %arg19[%c0_91, %c0_92, %c0_93] : memref<1x8x32xf32, #tpu.memory_space<vmem>>, vector<1x8x32xf32>
    %150 = vector.shape_cast %149 : vector<1x8x32xf32> to vector<8x32xf32>
    %151 = vector.shape_cast %148 : vector<8x32xf32> to vector<1x8x32xf32>
    tpu.vector_store %arg19[%c0_91, %c0_92, %c0_93], %151 {strides = array<i32>} : memref<1x8x32xf32, #tpu.memory_space<vmem>>, vector<1x8x32xf32>,
    return
  }
  func.func @transform_0(%arg0: i32, %arg1: i32) -> (i32, i32, i32) {
    %c0_i32 = arith.constant 0 : i32
    %c0_i32_0 = arith.constant 0 : i32
    %c0_i32_1 = arith.constant 0 : i32
    return %arg0, %c0_i32, %c0_i32_0 : i32, i32, i32
  }
  func.func @transform_1(%arg0: i32, %arg1: i32) -> (i32, i32) {
    %c0_i32 = arith.constant 0 : i32
    %c0_i32_0 = arith.constant 0 : i32
    %c0_i32_1 = arith.constant 0 : i32
    return %c0_i32, %c0_i32_0 : i32, i32
  }
  func.func @transform_2(%arg0: i32, %arg1: i32) -> (i32, i32) {
    %c0_i32 = arith.constant 0 : i32
    %c0_i32_0 = arith.constant 0 : i32
    %c0_i32_1 = arith.constant 0 : i32
    return %c0_i32, %c0_i32_0 : i32, i32
  }
  func.func @transform_3(%arg0: i32, %arg1: i32) -> (i32, i32) {
    %c0_i32 = arith.constant 0 : i32
    %c0_i32_0 = arith.constant 0 : i32
    %c0_i32_1 = arith.constant 0 : i32
    return %c0_i32, %c0_i32_0 : i32, i32
  }
  func.func @transform_4(%arg0: i32, %arg1: i32) -> (i32, i32) {
    %c0_i32 = arith.constant 0 : i32
    %c0_i32_0 = arith.constant 0 : i32
    %c0_i32_1 = arith.constant 0 : i32
    return %c0_i32, %c0_i32_0 : i32, i32
  }
  func.func @transform_5(%arg0: i32, %arg1: i32) -> (i32, i32) {
    %c0_i32 = arith.constant 0 : i32
    %c0_i32_0 = arith.constant 0 : i32
    %c0_i32_1 = arith.constant 0 : i32
    return %c0_i32, %c0_i32_0 : i32, i32
  }
  func.func @transform_6(%arg0: i32, %arg1: i32) -> (i32, i32) {
    %c0_i32 = arith.constant 0 : i32
    %c0_i32_0 = arith.constant 0 : i32
    %c0_i32_1 = arith.constant 0 : i32
    return %c0_i32, %c0_i32_0 : i32, i32
  }
  func.func @transform_7(%arg0: i32, %arg1: i32) -> (i32, i32) {
    %c0_i32 = arith.constant 0 : i32
    %c0_i32_0 = arith.constant 0 : i32
    %c0_i32_1 = arith.constant 0 : i32
    return %c0_i32, %c0_i32_0 : i32, i32
  }
  func.func @transform_8(%arg0: i32, %arg1: i32) -> (i32, i32) {
    %c0_i32 = arith.constant 0 : i32
    %c0_i32_0 = arith.constant 0 : i32
    %c0_i32_1 = arith.constant 0 : i32
    return %c0_i32, %c0_i32_0 : i32, i32
  }
  func.func @transform_9(%arg0: i32, %arg1: i32) -> (i32, i32) {
    %c0_i32 = arith.constant 0 : i32
    %c0_i32_0 = arith.constant 0 : i32
    %c0_i32_1 = arith.constant 0 : i32
    return %c0_i32, %c0_i32_0 : i32, i32
  }
  func.func @transform_10(%arg0: i32, %arg1: i32) -> (i32, i32) {
    %c0_i32 = arith.constant 0 : i32
    %c0_i32_0 = arith.constant 0 : i32
    %c0_i32_1 = arith.constant 0 : i32
    return %c0_i32, %c0_i32_0 : i32, i32
  }
  func.func @transform_11(%arg0: i32, %arg1: i32) -> (i32, i32) {
    %c0_i32 = arith.constant 0 : i32
    %c0_i32_0 = arith.constant 0 : i32
    %c0_i32_1 = arith.constant 0 : i32
    return %c0_i32, %c0_i32_0 : i32, i32
  }
  func.func @transform_12(%arg0: i32, %arg1: i32) -> (i32, i32) {
    %c0_i32 = arith.constant 0 : i32
    %c0_i32_0 = arith.constant 0 : i32
    %c0_i32_1 = arith.constant 0 : i32
    return %c0_i32, %c0_i32_0 : i32, i32
  }
  func.func @transform_13(%arg0: i32, %arg1: i32) -> (i32, i32) {
    %c0_i32 = arith.constant 0 : i32
    %c0_i32_0 = arith.constant 0 : i32
    %c0_i32_1 = arith.constant 0 : i32
    return %c0_i32, %c0_i32_0 : i32, i32
  }
  func.func @transform_14(%arg0: i32, %arg1: i32) -> (i32, i32) {
    %c0_i32 = arith.constant 0 : i32
    %c0_i32_0 = arith.constant 0 : i32
    %c0_i32_1 = arith.constant 0 : i32
    return %c0_i32, %c0_i32_0 : i32, i32
  }
  func.func @transform_15(%arg0: i32, %arg1: i32) -> (i32, i32) {
    %c0_i32 = arith.constant 0 : i32
    %c0_i32_0 = arith.constant 0 : i32
    %c0_i32_1 = arith.constant 0 : i32
    return %c0_i32, %c0_i32_0 : i32, i32
  }
  func.func @transform_16(%arg0: i32, %arg1: i32) -> (i32, i32) {
    %c0_i32 = arith.constant 0 : i32
    %c0_i32_0 = arith.constant 0 : i32
    %c0_i32_1 = arith.constant 0 : i32
    return %c0_i32, %c0_i32_0 : i32, i32
  }
  func.func @transform_17(%arg0: i32, %arg1: i32) -> (i32, i32, i32) {
    %c0_i32 = arith.constant 0 : i32
    %c0_i32_0 = arith.constant 0 : i32
    return %arg0, %arg1, %c0_i32 : i32, i32, i32
  }
}

</mosaic_0001>

<bundles_post_ra>
// kernel: tpu_custom_call.1
= control target key start
LH: loop header
LB: loop body
LE: loop exit
PB: predicated region body
PF: predicated region fallthrough
CT: control target
= control target key end

     0   :  { %s2977_s0 = inlined_call_operand.hbm [shape: f32[2,8,32], index: 0, kind: input, shape index: {}]   ;;  %s2978_s1 = inlined_call_operand.hbm [shape: f32[1,32], index: 1, kind: input, shape index: {}]   ;;  %s2979_s2 = inlined_call_operand.vmem [shape: f32[1,32], index: 2, kind: input, shape index: {}]   ;;  %s2980_s3 = inlined_call_operand.vmem [shape: f32[32,32], index: 3, kind: input, shape index: {}]   ;;  %s2981_s4 = inlined_call_operand.vmem [shape: f32[1,32], index: 4, kind: input, shape index: {}]   ;;  %s2982_s5 = inlined_call_operand.vmem [shape: f32[32,32], index: 5, kind: input, shape index: {}]   ;;  %s2983_s6 = inlined_call_operand.vmem [shape: f32[1,32], index: 6, kind: input, shape index: {}]   ;;  %s2984_s7 = inlined_call_operand.vmem [shape: f32[32,32], index: 7, kind: input, shape index: {}]   ;;  %s2985_s8 = inlined_call_operand.vmem [shape: f32[1,32], index: 8, kind: input, shape index: {}]   ;;  %s2986_s9 = inlined_call_operand.vmem [shape: f32[32,32], index: 9, kind: input, shape index: {}]   ;;  %s2987_s10 = inlined_call_operand.vmem [shape: f32[1,32], index: 10, kind: input, shape index: {}]   ;;  %s2988_s11 = inlined_call_operand.vmem [shape: f32[1,32], index: 11, kind: input, shape index: {}]   ;;  %s2989_s12 = inlined_call_operand.vmem [shape: f32[1,32], index: 12, kind: input, shape index: {}]   ;;  %s2990_s13 = inlined_call_operand.vmem [shape: f32[32,128], index: 13, kind: input, shape index: {}]   ;;  %s2991_s14 = inlined_call_operand.vmem [shape: f32[1,128], index: 14, kind: input, shape index: {}]   ;;  %s2992_s15 = inlined_call_operand.vmem [shape: f32[128,32], index: 15, kind: input, shape index: {}]   ;;  %s2993_s16 = inlined_call_operand.vmem [shape: f32[1,32], index: 16, kind: input, shape index: {}]   ;;  %s2994_s17 = inlined_call_operand.hbm [shape: f32[2,8,32], index: 17, kind: output, shape index: {}]  }
   0x1   :  { %3009 = sst [smem:[#allocation26_spill]] %s2977_s0 }
   0x2   :  { %3010 = sst [smem:[#allocation27_spill]] %s2978_s1 }
   0x3   :  { %3011 = sst [smem:[#allocation28_spill]] %s2991_s14 }
   0x4   :  { %3012 = sst [smem:[#allocation29_spill]] %s2993_s16 }
   0x5   :  { %3013 = sst [smem:[#allocation30_spill]] %s2994_s17 }
   0x6   :  { %22 = vsyncpa [#allocation8], 0 }
   0x7   :  { %23 = vsyncpa [#allocation11], 0 }
   0x8   :  { %24 = vsyncpa [#allocation9], 0 }
   0x9   :  { %26 = vsyncpa [#allocation9 + $0x1], 0  ;;  %s2392_s24 = smov 0   ;;  %s2394_s25 = smov 0  }
   0xa   :  { %s2396_s26 = smov 0   ;;  %s2398_s27 = smov 0  }
   0xb   :  { %s2400_s28 = smov 0   ;;  %s2402_s29 = smov 0  }
   0xc LB: > { %3014 = sst [smem:[#allocation16_spill]] %s2266_s24  ;;  %s1976_s0 = sadd.s32 4294967295, %s2286_s29   ;;  %s2286_s29 = sphi %s2402_s29, %s32_s29   ;;  %s2282_s28 = sphi %s2400_s28, %s3049_s28   ;;  %s2278_s27 = sphi %s2398_s27, %s3048_s27   ;;  %s2274_s26 = sphi %s2396_s26, %s3047_s26   ;;  %s2270_s25 = sphi %s2394_s25, %s3046_s25   ;;  %s2266_s24 = sphi %s2392_s24, %s3045_s24  }
   0xd   : > { %3015 = sst [smem:[#allocation17_spill]] %s2270_s25  ;;  %s1977_s30 = sadd.s32 4294967294, %s2286_s29  }
   0xe   : > { %3016 = sst [smem:[#allocation18_spill]] %s2274_s26  ;;  %s44_s18 = sadd.s32 1, %s2282_s28 }
   0xf   : > { %3017 = sst [smem:[#allocation19_spill]] %s2278_s27  ;;  %s51_s19 = sadd.s32 1, %s2274_s26 }
  0x10   : > { %3018 = sst [smem:[#allocation20_spill]] %s2282_s28  ;;  %p46_p0 = scmp.ge.s32.totalorder %s44_s18, 2 }
  0x11   : > { %3019 = sst [smem:[#allocation21_spill]] %s2286_s29  ;;  %p64_p1 = scmp.ne.s32.totalorder %s2270_s25, %s2266_s24 }
  0x12   : > { %p2428_p2 = scmp.eq.s32.totalorder %s1976_s0, 0  ;;  %p425_p3 = scmp.ne.s32.totalorder %s2274_s26, %s2270_s25 }
  0x13   : > { %s3051_s18 = smov (%p46_p0, %s44_s18), 0  ;;  %p426_p5 = scmp.eq.s32.totalorder %s1976_s0, 1 }
  0x14   : > { %3021 = sst [smem:[#allocation22_spill]] %s3051_s18  ;;  %p2438_p4 = por %p2428_p2, %p64_p1 }
  0x15   : > { %s48_s21 = ssub.s32 %s2282_s28, %s3051_s18  ;;  %p432_p6 = scmp.eq.s32.totalorder %s1977_s30, 1 }
  0x16   : > { %p49_p7 = scmp.eq.s32.totalorder %s48_s21, 0  ;;  %p2444_p8 = por %p426_p5, %p425_p3 }
  0x17   : > { %p2448_p9 = por %p432_p6, %p64_p1  ;;  %p1978_p10 = scmp.ge.s32.totalorder %s2286_s29, 1 }
  0x18   : > { %s3023_s22 = scalar_select %p2444_p8, 1, 0 }
  0x19   : > { %s3025_s23 = scalar_select %p2448_p9, 1, 0 }
  0x1a   : > { %3024 = sst [smem:[#allocation23_spill]] %s3023_s22  ;;  %p439_p11 = scmp.lt.s32.totalorder %s2286_s29, 3 }
  0x1b   : > { %3026 = sst [smem:[#allocation24_spill]] %s3025_s23  ;;  %s3006_s17 = sshll.u32 %s2278_s27, 3 }
  0x1c   : > { %s2454_s24 = scalar_select %p49_p7, %s2274_s26, %s51_s19  }
  0x1d   : > { %s3028_s30 = sld [smem:[#allocation26_spill]]  ;;  %p2463_p12 = pnand %p1978_p10, %p439_p11 }
  0x1e   : > { %3027 = sst [smem:[#allocation25_spill]] %s2454_s24  ;;  %s2288_s16 = smov [#allocation7]  }
  0x1f   : > { %s455_s23 = sshll.u32 %s2288_s16, 4  ;;  %p2014_p13 = pneg %p2463_p12  ;;  %s456_s23 = int_to_ptr.vmem [resolvable:$true] %s455_s23 }
  0x20   : > { %s3030_s26 = sld [smem:[#allocation27_spill]]  ;;  %s2289_s16 = smov [#allocation10]  }
  0x21   : > { %p2474_p0 = pnand %p2014_p13, %p2438_p4  ;;  %p2480_p1 = pnand %p2014_p13, %p2428_p2 }
  0x23   : > { %s451_s21 = scalar_lea.hbm %s3028_s30, %s3006_s17  ;;  %p2144_p5 = pneg %p2474_p0 }
  0x24   : > { %s453_s22 = sshll.u32 %s451_s21, 4  ;;  %s467_s21 = sshll.u32 %s2289_s16, 4  ;;  %s454_s22 = int_to_ptr.hbm [resolvable:$true] %s453_s22  ;;  %s468_s21 = int_to_ptr.vmem [resolvable:$true] %s467_s21 }
  0x25   : > { %s2140_s17 = sshra.s32 %s454_s22, 4  ;;  %s2147_s19 = scalar_lea.hbm %s3028_s30, 16  ;;  %s2141_s17 = int_to_ptr.hbm [resolvable:$true] %s2140_s17 }
  0x26   : > { %s465_s29 = sshll.u32 %s3030_s26, 4  ;;  %s2142_s27 = scalar_lea.hbm %s2141_s17, 8  ;;  %s466_s29 = int_to_ptr.hbm [resolvable:$true] %s465_s29 }
  0x27   : > { %p2143_p3 = scmp.ne.s32.totalorder %s2141_s17, %s2142_s27  ;;  %p2148_p10 = scmp.lt.s32.totalorder %s2141_s17, %s3028_s30 }
  0x28   : > { %p2149_p11 = scmp.lt.s32.totalorder %s2147_s19, %s2142_s27 }
  0x29   : > { %p2145_p6 = pnand %p2144_p5, %p2143_p3 }
  0x2a   : > { %p2150_p13 = por %p2149_p11, %p2148_p10 }
  0x2b   : > { %p2146_p7 = pneg %p2145_p6 }
  0x2d   : > { %p2151_p9 = pnand %p2150_p13, %p2146_p7 }
  0x2f   : > { %2154 = shalt.err (!%p2151_p9)
}
  0x30   : > { %2017 = dma.hbm_to_vmem [thread:$0]  (!%p2474_p0), %s454_s22, 128, %s456_s23, [#allocation8]  }
  0x31   : > { %2020 = dma.hbm_to_vmem [thread:$0]  (!%p2480_p1), %s466_s29, 16, %s468_s21, [#allocation11]  }
  0x32   : > { %525 = sbr.rel (%p2463_p12) target bundleno = 2118 (0x846), region = 88 }
  0x37   : > { %2253 = dma.done.wait (%p2438_p4), [#allocation8], 128  }
  0x38   : > { %2255 = vsyncadd (%p2438_p4), [#allocation8], 4294967168 }
  0x39   : > { %2257 = dma.done.wait (%p2428_p2), [#allocation11], 16  }
  0x3a   : > { %2259 = vsyncadd (%p2428_p2), [#allocation11], 4294967280  ;;  %vm585_vm0 = vcmask 261120   ;;  %v582_v0 = vld [vmem:[#allocation7] sm:$0xff]  ;;  %v2290_v2 = vmov 32.0   ;;  %v626_v19 = vld [vmem:[%s2982_s5 + $0x18] sm:$0xff] }
  0x3b   : > { %v586_v1 = vsel %vm585_vm0, %v582_v0, 0.0  ;;  %2105 = vrcp.f32 %v2290_v2  ;;  %646 = vmatpush.msra.mxu1 %v626_v19  ;;  %v625_v20 = vld [vmem:[%s2982_s5 + $0x10] sm:$0xff]  ;;  %v624_v21 = vld [vmem:[%s2982_s5 + $0x8] sm:$0xff]  ;;  %v623_v22 = vld [vmem:[%s2982_s5] sm:$0xff]  ;;  %s2291_s21 = smov 104   ;;  %s2292_s24 = smov 120  }
  0x3c   : > { %587 = vadd.xlane.f32.xlu0 %v586_v1  ;;  %v657_v23 = vld [vmem:[%s2984_s7 + $0x18] sm:$0xff]  ;;  %v656_v25 = vld [vmem:[%s2984_s7 + $0x10] sm:$0xff]  ;;  %v655_v27 = vld [vmem:[%s2984_s7 + $0x8] sm:$0xff]  ;;  %s2293_s14 = smov 112   ;;  %vm693_vm8 = vcmask 1047556   ;;  %vm803_vm9 = vcmask 64512  }
  0x3d   : > { %647 = vmatpush.msra.mxu1 %v625_v20  ;;  %v978_v24 = vld [vmem:[%s2980_s3 + $0x18] sm:$0xff]  ;;  %v977_v26 = vld [vmem:[%s2980_s3 + $0x10] sm:$0xff]  ;;  %v976_v28 = vld [vmem:[%s2980_s3 + $0x8] sm:$0xff]  ;;  %vm1127_vm10 = vcmask 7168   ;;  %s2299_s27 = smov 24   ;;  %s2300_s28 = smov 16  }
  0x3e   : > { %998 = vmatpush.msra.mxu2 %v978_v24  ;;  %v654_v31 = vld [vmem:[%s2984_s7] sm:$0xff]  ;;  %v2093_v45 = vld [vmem:[#allocation10] ss:$0 sm:$0xff]  ;;  %s2301_s29 = smov 8   ;;  %s3033_s26 = sld [smem:[#allocation28_spill]] }
  0x3f   : > { %648 = vmatpush.msra.mxu1 %v624_v21  ;;  %v975_v32 = vld [vmem:[%s2980_s3] sm:$0xff]  ;;  %v2095_v55 = vld [vmem:[#allocation10] ss:$0 sm:$0xff]  ;;  %s3034_s16 = sld [smem:[#allocation17_spill]] }
  0x40   : > { %999 = vmatpush.msra.mxu2 %v977_v26  ;;  %v2094_v49 = vld [vmem:[%s2979_s2] ss:$0 sm:$0xff]  ;;  %s3036_s17 = sld [smem:[#allocation29_spill]] }
  0x41   : > { %v2106_v3 = vpop.eup %2105  ;;  %649 = vmatpush.msra.mxu1 %v623_v22  ;;  %v2096_v58 = vld [vmem:[%s2979_s2] ss:$0 sm:$0xff] }
  0x42   : > { %v590_v4 = vmul.f32 32.0, %v2106_v3  ;;  %vm594_vm1 = vweird.f32 %v2106_v3  ;;  %1000 = vmatpush.msra.mxu2 %v976_v28  ;;  %v2097_v61 = vld [vmem:[%s2983_s6] ss:$0 sm:$0xff] }
  0x43   : > { %674 = vmatpush.msrb.mxu1 %v657_v23 }
  0x44   : > { %939 = vadd.xlane.f32.xlu0 %v586_v1  ;;  %v591_v5 = vsub.f32 1.0, %v590_v4  ;;  %1001 = vmatpush.msra.mxu2 %v975_v32 }
  0x45   : > { %675 = vmatpush.msrb.mxu1 %v656_v25 }
  0x46   : > { %v592_v6 = vmul.f32 %v2106_v3, %v591_v5 }
  0x47   : > { %676 = vmatpush.msrb.mxu1 %v655_v27 }
  0x48   : > { %v593_v7 = vadd.f32 %v2106_v3, %v592_v6 }
  0x49   : > { %677 = vmatpush.msrb.mxu1 %v654_v31 }
  0x4a   : > { %v2507_v8 = vsel %vm594_vm1, %v2106_v3, %v593_v7  ;;  %v2099_v3 = vld [vmem:[%s2981_s4] ss:$0 sm:$0xff] }
  0xaf   : > { %v588_v9 = vpop.xlane.xlu0 %587 }
  0xb0   : > { %v596_v10 = vmul.f32 %v2507_v8, %v588_v9  ;;  %v2294_v9 = vmov 1983009808  }
  0xb2   : > { %v597_v11 = vsub.f32 %v582_v0, %v596_v10  ;;  %v698_v10 = vunpack.c.l.s4 %v2294_v9 }
  0xb4   : > { %v598_v12 = vmul.f32 %v597_v11, %v597_v11 }
  0xb6   : > { %v599_v13 = vsel %vm585_vm0, %v598_v12, 0.0 }
  0xb7   : > { %600 = vadd.xlane.f32.xlu1 %v599_v13  ;;  %v940_v14 = vpop.xlane.xlu0 %939 }
  0xb8   : > { %v948_v15 = vmul.f32 %v940_v14, %v2507_v8  ;;  %v2579_v14 = vunpack.c.0.s8 %v698_v10 }
  0xba   : > { %v2512_v16 = vsub.f32 %v582_v0, %v948_v15  ;;  %v2098_v0 = vld [vmem:[%s2985_s8] ss:$0 sm:$0xff] }
  0xbc   : > { %v950_v17 = vmul.f32 %v2512_v16, %v2512_v16 }
  0xbe   : > { %v951_v18 = vsel %vm585_vm0, %v950_v17, 0.0  ;;  %v2295_v17 = vmov 1934713408  }
  0xbf   : > { %952 = vadd.xlane.f32.xlu1 %v951_v18  ;;  %v722_v18 = vunpack.c.l.s4 %v2295_v17 }
  0xc1   : > { %v2587_v25 = vunpack.c.0.s8 %v722_v18 }
 0x12a   : > { %v601_v29 = vpop.xlane.xlu1 %600 }
 0x12b   : > { %v602_v30 = vmul.f32 %v601_v29, %v2507_v8 }
 0x12d   : > { %v603_v33 = vadd.f32 1e-06, %v602_v30 }
 0x12f   : > { %2107 = vrsqrt.f32 %v603_v33  ;;  %vm610_vm3 = vweird.f32 %v603_v33 }
 0x132   : > { %v953_v34 = vpop.xlane.xlu1 %952 }
 0x133   : > { %v954_v35 = vmul.f32 %v953_v34, %v2507_v8 }
 0x135   : > { %v2108_v36 = vpop.eup %2107  ;;  %v955_v37 = vadd.f32 1e-06, %v954_v35 }
 0x136   : > { %v605_v38 = vmul.f32 %v2108_v36, %v603_v33  ;;  %vm611_vm2 = vweird.f32 %v2108_v36 }
 0x137   : > { %2109 = vrsqrt.f32 %v955_v37  ;;  %vm612_vm4 = vmor %vm610_vm3, %vm611_vm2  ;;  %vm962_vm6 = vweird.f32 %v955_v37 }
 0x138   : > { %v606_v39 = vmul.f32 %v2108_v36, %v605_v38 }
 0x13a   : > { %v607_v40 = vmul.f32 0.5, %v606_v39 }
 0x13c   : > { %v608_v41 = vsub.f32 1.5, %v607_v40 }
 0x13d   : > { %v2110_v42 = vpop.eup %2109 }
 0x13e   : > { %v609_v43 = vmul.f32 %v2108_v36, %v608_v41  ;;  %v957_v44 = vmul.f32 %v2110_v42, %v955_v37  ;;  %vm963_vm5 = vweird.f32 %v2110_v42 }
 0x13f   : > { %vm964_vm7 = vmor %vm962_vm6, %vm963_vm5 }
 0x140   : > { %v613_v46 = vsel %vm612_vm4, %v2108_v36, %v609_v43  ;;  %v958_v47 = vmul.f32 %v2110_v42, %v957_v44 }
 0x141   : > { %v614_v48 = vmul.f32 %v613_v46, %v597_v11 }
 0x142   : > { %v959_v50 = vmul.f32 0.5, %v958_v47 }
 0x143   : > { %v618_v51 = vmul.f32 %v2093_v45, %v614_v48 }
 0x144   : > { %v960_v52 = vsub.f32 1.5, %v959_v50 }
 0x145   : > { %v622_v53 = vadd.f32 %v2094_v49, %v618_v51 }
 0x146   : > { %v961_v54 = vmul.f32 %v2110_v42, %v960_v52 }
 0x147   : > { %1984 = vmatmul.msk.f32.vlgmr.msra.gmra.mxu1 %vm585_vm0, %v622_v53 }
 0x148   : > { %v965_v56 = vsel %vm964_vm7, %v2110_v42, %v961_v54 }
 0x149   : > { %v966_v57 = vmul.f32 %v965_v56, %v2512_v16 }
 0x14b   : > { %v970_v59 = vmul.f32 %v2095_v55, %v966_v57 }
 0x14d   : > { %v974_v60 = vadd.f32 %v2096_v58, %v970_v59 }
 0x14f   : > { %1985 = vmatmul.msk.f32.vlgmr.msrb.gmra.mxu1 %vm585_vm0, %v622_v53  ;;  %1986 = vmatmul.msk.f32.vlgmr.msra.gmra.mxu2 %vm585_vm0, %v974_v60 }
 0x1c4   : > { %v651_v62 = vpop.f32.mrf.mxu1 }
 0x1c5   : > { %v652_v63 = vadd.f32 %v2097_v61, %v651_v62 }
 0x1c7   : > { %689 = vrot.lane.b32.xlu0 %v652_v63, %s2291_s21  ;;  %683 = vrot.lane.b32.xlu2 %v652_v63, %s2292_s24  ;;  %v695_v13 = vrot.slane %v652_v63, 4 }
 0x1cc   : > { %v679_v1 = vpop.f32.mrf.mxu1 }
 0x1cd   : > { %v2571_v2 = vadd.f32 %v2098_v0, %v679_v1 }
 0x1cf   : > { %809 = vrot.lane.b32.xlu0 %v2571_v2, %s2292_s24  ;;  %686 = vrot.lane.b32.xlu2 %v652_v63, %s2293_s14  ;;  %v820_v48 = vrot.slane %v2571_v2, 4 }
 0x1d2   : > { %v1003_v4 = vpop.f32.mrf.mxu2 }
 0x1d3   : > { %v1004_v5 = vadd.f32 %v2099_v3, %v1003_v4 }
 0x1d5   : > { %1007 = vrot.lane.b32.xlu1 %v1004_v5, %s2292_s24  ;;  %v1019_v30 = vrot.slane %v1004_v5, 4  ;;  %s575_s24 = sand.u32 1, %s3034_s16  }
 0x1d6   : > { %s1878_s16 = scalar_lea.sflag [#allocation9], %s575_s24 }
 0x1d7   : > { %1010 = vrot.lane.b32.xlu2 %v1004_v5, %s2293_s14 }
 0x1dd   : > { %815 = vrot.lane.b32.xlu1 %v2571_v2, %s2291_s21 }
 0x1df   : > { %1013 = vrot.lane.b32.xlu2 %v1004_v5, %s2291_s21  ;;  %s3035_s21 = sld [smem:[#allocation19_spill]] }
 0x1e5   : > { %s3037_s25 = sshll.u32 %s3035_s21, 3 }
 0x1e7   : > { %812 = vrot.lane.b32.xlu2 %v2571_v2, %s2293_s14 }
 0x221   : > { %v684_v6 = vpop.permute.xlu2 %683 }
 0x222   : > { %v707_v20 = vrot.slane %v684_v6, 4 }
 0x229   : > { %v687_v7 = vpop.permute.xlu2 %686 }
 0x22a   : > { %v692_v12 = vrot.slane %v687_v7, 4  ;;  %v696_v15 = vsel %vm693_vm8, %v687_v7, %v695_v13 }
 0x22b   : > { %v704_v19 = vperm.slane %v696_v15, %v2579_v14 }
 0x22c   : > { %v694_v16 = vsel %vm693_vm8, %v692_v12, %v652_v63 }
 0x22d   : > { %v700_v21 = vperm.slane %v694_v16, %v2579_v14  ;;  %v731_v28 = vrot.slane %v704_v19, 4 }
 0x22f   : > { %v719_v32 = vrot.slane %v700_v21, 4 }
 0x231   : > { %v1011_v11 = vpop.permute.xlu2 %1010 }
 0x232   : > { %v1016_v24 = vrot.slane %v1011_v11, 4  ;;  %v1020_v37 = vsel %vm693_vm8, %v1011_v11, %v1019_v30 }
 0x233   : > { %v2605_v46 = vperm.slane %v1020_v37, %v2579_v14 }
 0x234   : > { %v1018_v36 = vsel %vm693_vm8, %v1016_v24, %v1004_v5 }
 0x235   : > { %v2602_v45 = vperm.slane %v1018_v36, %v2579_v14  ;;  %v1055_v3 = vrot.slane %v2605_v46, 4 }
 0x237   : > { %v1043_v13 = vrot.slane %v2602_v45, 4 }
 0x239   : > { %v2585_v22 = vpop.permute.xlu2 %1013  ;;  %v690_v23 = vpop.permute.xlu0 %689 }
 0x23a   : > { %v705_v26 = vrot.slane %v690_v23, 4  ;;  %v708_v27 = vsel %vm693_vm8, %v690_v23, %v707_v20  ;;  %v1029_v7 = vrot.slane %v2585_v22, 4 }
 0x23b   : > { %v716_v29 = vperm.slane %v708_v27, %v2579_v14 }
 0x23c   : > { %v706_v31 = vsel %vm693_vm8, %v705_v26, %v684_v6 }
 0x23d   : > { %v712_v33 = vperm.slane %v706_v31, %v2579_v14  ;;  %v729_v34 = vrot.slane %v716_v29, 4  ;;  %v732_v35 = vsel %vm693_vm8, %v716_v29, %v731_v28 }
 0x23e   : > { %v740_v38 = vperm.slane %v732_v35, %v2587_v25 }
 0x23f   : > { %v717_v39 = vrot.slane %v712_v33, 4  ;;  %v720_v40 = vsel %vm693_vm8, %v712_v33, %v719_v32  ;;  %v730_v41 = vsel %vm693_vm8, %v729_v34, %v704_v19 }
 0x240   : > { %v728_v42 = vperm.slane %v720_v40, %v2587_v25  ;;  %v736_v43 = vperm.slane %v730_v41, %v2587_v25  ;;  %v747_v44 = vrot.slane %v740_v38, 4 }
 0x241   : > { %v718_v47 = vsel %vm693_vm8, %v717_v39, %v700_v21  ;;  %v813_v49 = vpop.permute.xlu2 %812 }
 0x242   : > { %v724_v50 = vperm.slane %v718_v47, %v2587_v25  ;;  %v743_v51 = vrot.slane %v728_v42, 4  ;;  %v745_v52 = vrot.slane %v736_v43, 4  ;;  %v748_v53 = vsel %vm693_vm8, 0.0, %v747_v44 }
 0x243   : > { %v760_v54 = vsel %vm693_vm8, %v747_v44, %v736_v43  ;;  %v765_v55 = vrot.slane %v748_v53, 4  ;;  %v818_v56 = vrot.slane %v813_v49, 4  ;;  %v821_v57 = vsel %vm693_vm8, %v813_v49, %v820_v48 }
 0x244   : > { %v741_v58 = vrot.slane %v724_v50, 4  ;;  %v744_v59 = vsel %vm693_vm8, 0.0, %v743_v51  ;;  %v746_v60 = vsel %vm693_vm8, 0.0, %v745_v52  ;;  %v749_v61 = vsel %vm693_vm8, %v743_v51, %v724_v50 }
 0x245   : > { %v753_v62 = vperm.slane %v749_v61, %v2579_v14  ;;  %v754_v63 = vrot.slane %v744_v59, 4  ;;  %v764_v0 = vperm.slane %v760_v54, %v2579_v14  ;;  %v766_v1 = vsel %vm693_vm8, %v765_v55, %v746_v60 }
 0x246   : > { %v742_v4 = vsel %vm693_vm8, 0.0, %v741_v58  ;;  %v770_v5 = vperm.slane %v766_v1, %v2579_v14  ;;  %v819_v6 = vsel %vm693_vm8, %v818_v56, %v2571_v2  ;;  %v2629_v17 = vperm.slane %v821_v57, %v2579_v14  ;;  %v810_v2 = vpop.permute.xlu0 %809 }
 0x247   : > { %v755_v9 = vsel %vm693_vm8, %v754_v63, %v742_v4  ;;  %v773_v10 = vrot.slane %v753_v62, 4  ;;  %v785_v11 = vrot.slane %v764_v0, 4  ;;  %v1008_v12 = vpop.permute.xlu1 %1007  ;;  %v2633_v19 = vperm.slane %v819_v6, %v2579_v14 }
 0x248   : > { %v759_v15 = vperm.slane %v755_v9, %v2579_v14  ;;  %v783_v16 = vrot.slane %v770_v5, 4  ;;  %v1030_v20 = vsel %vm693_vm8, %v1029_v7, %v1008_v12  ;;  %v1031_v21 = vrot.slane %v1008_v12, 4 }
 0x249   : > { %v786_v18 = vsel %vm693_vm8, %v770_v5, %v785_v11  ;;  %v1036_v31 = vperm.slane %v1030_v20, %v2579_v14  ;;  %v832_v34 = vrot.slane %v810_v2, 4  ;;  %v856_v61 = vrot.slane %v2629_v17, 4 }
 0x24a   : > { %v771_v23 = vrot.slane %v759_v15, 4  ;;  %v774_v24 = vsel %vm693_vm8, %v759_v15, %v773_v10  ;;  %v784_v26 = vsel %vm693_vm8, %v783_v16, %v764_v0  ;;  %v794_v27 = vperm.slane %v786_v18, %v2587_v25 }
 0x24b   : > { %v782_v28 = vperm.slane %v774_v24, %v2587_v25  ;;  %v790_v29 = vperm.slane %v784_v26, %v2587_v25  ;;  %v1032_v30 = vsel %vm693_vm8, %v2585_v22, %v1031_v21  ;;  %v1041_v39 = vrot.slane %v1036_v31, 4 }
 0x24c   : > { %v772_v32 = vsel %vm693_vm8, %v771_v23, %v753_v62  ;;  %v799_v33 = vrot.slane %v794_v27, 4  ;;  %v1040_v35 = vperm.slane %v1032_v30, %v2579_v14  ;;  %v1044_v41 = vsel %vm693_vm8, %v1036_v31, %v1043_v13 }
 0x24d   : > { %v778_v36 = vperm.slane %v772_v32, %v2587_v25  ;;  %v795_v37 = vrot.slane %v790_v29, 4  ;;  %v801_v38 = vrot.slane %v782_v28, 4  ;;  %v1042_v48 = vsel %vm693_vm8, %v1041_v39, %v2602_v45 }
 0x24e   : > { %v800_v40 = vsel %vm693_vm8, %v799_v33, %v782_v28  ;;  %v1053_v42 = vrot.slane %v1040_v35, 4  ;;  %v1056_v22 = vsel %vm693_vm8, %v1040_v35, %v1055_v3  ;;  %v1048_v50 = vperm.slane %v1042_v48, %v2587_v25 }
 0x24f   : > { %v796_v43 = vsel %vm693_vm8, %v795_v37, %v778_v36  ;;  %v797_v44 = vrot.slane %v778_v36, 4  ;;  %v802_v47 = vsel %vm693_vm8, %v794_v27, %v801_v38  ;;  %806 = vst.msk [vmem:[#allocation2 + $0x10] sm:$0xff] %vm803_vm9, %v800_v40  ;;  %v816_v49 = vpop.permute.xlu1 %815  ;;  %v1052_v51 = vperm.slane %v1044_v41, %v2587_v25 }
 0x250   : > { %804 = vst.msk [vmem:[#allocation2] sm:$0xff] %vm803_vm9, %v796_v43  ;;  %v1054_v52 = vsel %vm693_vm8, %v1053_v42, %v2605_v46  ;;  %v1064_v53 = vperm.slane %v1056_v22, %v2587_v25  ;;  %v830_v56 = vrot.slane %v816_v49, 4  ;;  %v833_v45 = vsel %vm693_vm8, %v816_v49, %v832_v34 }
 0x251   : > { %v798_v54 = vsel %vm693_vm8, %v790_v29, %v797_v44  ;;  %807 = vst.msk [vmem:[#allocation2 + $0x18] sm:$0xff] %vm803_vm9, %v802_v47  ;;  %v1060_v55 = vperm.slane %v1054_v52, %v2587_v25  ;;  %v1065_v57 = vrot.slane %v1048_v50, 4  ;;  %v1067_v58 = vrot.slane %v1052_v51, 4 }
 0x252   : > { %805 = vst.msk [vmem:[#allocation2 + $0x8] sm:$0xff] %vm803_vm9, %v798_v54  ;;  %v1071_v59 = vrot.slane %v1064_v53, 4  ;;  %v841_v60 = vperm.slane %v833_v45, %v2579_v14  ;;  %v844_v46 = vrot.slane %v2633_v19, 4  ;;  %v831_v63 = vsel %vm693_vm8, %v830_v56, %v810_v2 }
 0x253   : > { %v1069_v62 = vrot.slane %v1060_v55, 4  ;;  %v1066_v0 = vsel %vm693_vm8, 0.0, %v1065_v57  ;;  %v1068_v1 = vsel %vm693_vm8, 0.0, %v1067_v58  ;;  %v1073_v4 = vsel %vm693_vm8, %v1067_v58, %v1048_v50 }
 0x254   : > { %v1072_v3 = vsel %vm693_vm8, 0.0, %v1071_v59  ;;  %v2676_v6 = vperm.slane %v1073_v4, %v2579_v14  ;;  %v1078_v7 = vrot.slane %v1068_v1, 4  ;;  %v1084_v9 = vsel %vm693_vm8, %v1071_v59, %v1060_v55 }
 0x255   : > { %v1070_v5 = vsel %vm693_vm8, 0.0, %v1069_v62  ;;  %v1089_v10 = vrot.slane %v1072_v3, 4  ;;  %v837_v11 = vperm.slane %v831_v63, %v2579_v14  ;;  %v854_v12 = vrot.slane %v841_v60, 4 }
 0x256   : > { %v857_v13 = vsel %vm693_vm8, %v841_v60, %v856_v61  ;;  %v1143_v15 = vld [vmem:[#allocation2 + $0x10] sm:$0xff]  ;;  %v1079_v16 = vsel %vm693_vm8, %v1078_v7, %v1066_v0  ;;  %v1097_v18 = vrot.slane %v2676_v6, 4  ;;  %v1088_v21 = vperm.slane %v1084_v9, %v2579_v14 }
 0x257   : > { %v865_v2 = vperm.slane %v857_v13, %v2587_v25  ;;  %1991 = vmatpush.xpose.msk.msrb.mxu2 %vm803_vm9, %v1143_v15  ;;  %v1141_v20 = vld [vmem:[#allocation2] sm:$0xff]  ;;  %v1083_v23 = vperm.slane %v1079_v16, %v2579_v14  ;;  %v842_v24 = vrot.slane %v837_v11, 4  ;;  %v845_v26 = vsel %vm693_vm8, %v837_v11, %v844_v46 }
 0x258   : > { %v855_v27 = vsel %vm693_vm8, %v854_v12, %v2629_v17  ;;  %1987 = vmatpush.xpose.msk.msra.mxu3 %vm803_vm9, %v1141_v20  ;;  %v1144_v28 = vld [vmem:[#allocation2 + $0x18] sm:$0xff]  ;;  %v853_v29 = vperm.slane %v845_v26, %v2587_v25  ;;  %v1090_v33 = vsel %vm693_vm8, %v1089_v10, %v1070_v5  ;;  %v1109_v36 = vrot.slane %v1088_v21, 4 }
 0x259   : > { %v861_v30 = vperm.slane %v855_v27, %v2587_v25  ;;  %v872_v31 = vrot.slane %v865_v2, 4  ;;  %1993 = vmatpush.xpose.msk.msra.mxu1 %vm803_vm9, %v1144_v28  ;;  %v1142_v32 = vld [vmem:[#allocation2 + $0x8] sm:$0xff]  ;;  %v843_v34 = vsel %vm693_vm8, %v842_v24, %v2633_v19  ;;  %v1094_v17 = vperm.slane %v1090_v33, %v2579_v14 }
 0x25a   : > { %v1098_v35 = vsel %vm693_vm8, %v1083_v23, %v1097_v18  ;;  %v849_v37 = vperm.slane %v843_v34, %v2587_v25  ;;  %v868_v38 = vrot.slane %v853_v29, 4  ;;  %v1095_v59 = vrot.slane %v1083_v23, 4 }
 0x25b   : > { %v870_v39 = vrot.slane %v861_v30, 4  ;;  %v873_v40 = vsel %vm693_vm8, 0.0, %v872_v31  ;;  %v885_v41 = vsel %vm693_vm8, %v872_v31, %v861_v30  ;;  %v1106_v22 = vperm.slane %v1098_v35, %v2587_v25 }
 0x25c   : > { %1989 = vmatpush.xpose.msk.msrb.mxu3 %vm803_vm9, %v1142_v32  ;;  %v890_v42 = vrot.slane %v873_v40, 4  ;;  %v1110_v19 = vsel %vm693_vm8, %v1094_v17, %v1109_v36  ;;  %v866_v43 = vrot.slane %v849_v37, 4  ;;  %v869_v44 = vsel %vm693_vm8, 0.0, %v868_v38 }
 0x25d   : > { %v871_v47 = vsel %vm693_vm8, 0.0, %v870_v39  ;;  %v874_v48 = vsel %vm693_vm8, %v868_v38, %v849_v37  ;;  %v879_v50 = vrot.slane %v869_v44, 4  ;;  %v889_v51 = vperm.slane %v885_v41, %v2579_v14 }
 0x25e   : > { %v878_v49 = vperm.slane %v874_v48, %v2579_v14  ;;  %v891_v52 = vsel %vm693_vm8, %v890_v42, %v871_v47  ;;  %v867_v53 = vsel %vm693_vm8, 0.0, %v866_v43  ;;  %v1118_v55 = vperm.slane %v1110_v19, %v2587_v25 }
 0x25f   : > { %v895_v54 = vperm.slane %v891_v52, %v2579_v14  ;;  %v1125_v56 = vrot.slane %v1106_v22, 4  ;;  %v880_v45 = vsel %vm693_vm8, %v879_v50, %v867_v53  ;;  %v910_v58 = vrot.slane %v889_v51, 4 }
 0x260   : > { %v898_v57 = vrot.slane %v878_v49, 4  ;;  %v884_v60 = vperm.slane %v880_v45, %v2579_v14  ;;  %v1123_v62 = vrot.slane %v1118_v55, 4  ;;  %v1107_v0 = vrot.slane %v1094_v17, 4 }
 0x261   : > { %v908_v46 = vrot.slane %v895_v54, 4  ;;  %v1126_v61 = vsel %vm693_vm8, %v1118_v55, %v1125_v56  ;;  %v911_v63 = vsel %vm693_vm8, %v895_v54, %v910_v58  ;;  %v1096_v11 = vsel %vm693_vm8, %v1095_v59, %v2676_v6 }
 0x262   : > { %1994 = vmatmul.msk.f32.vlgmr.msra.gmra.mxu1 %vm803_vm9, %v1126_v61  ;;  %v896_v1 = vrot.slane %v884_v60, 4  ;;  %v899_v3 = vsel %vm693_vm8, %v884_v60, %v898_v57  ;;  %v919_v5 = vperm.slane %v911_v63, %v2587_v25  ;;  %v1124_v10 = vsel %vm693_vm8, %v1123_v62, %v1106_v22 }
 0x263   : > { %v909_v4 = vsel %vm693_vm8, %v908_v46, %v889_v51  ;;  %v907_v7 = vperm.slane %v899_v3, %v2587_v25  ;;  %1992 = vmatmul.msk.f32.vlgmr.msrb.gmra.mxu2 %vm803_vm9, %v1124_v10  ;;  %v1108_v15 = vsel %vm693_vm8, %v1107_v0, %v1088_v21  ;;  %v1102_v24 = vperm.slane %v1096_v11, %v2587_v25 }
 0x264   : > { %v915_v9 = vperm.slane %v909_v4, %v2587_v25  ;;  %v897_v12 = vsel %vm693_vm8, %v896_v1, %v878_v49  ;;  %v924_v13 = vrot.slane %v919_v5, 4  ;;  %v1114_v20 = vperm.slane %v1108_v15, %v2587_v25 }
 0x265   : > { %v903_v16 = vperm.slane %v897_v12, %v2587_v25  ;;  %v926_v2 = vrot.slane %v907_v7, 4  ;;  %v1121_v30 = vrot.slane %v1102_v24, 4  ;;  %v2296_v35 = vmov -inf  }
 0x266   : > { %v920_v18 = vrot.slane %v915_v9, 4  ;;  %v925_v23 = vsel %vm693_vm8, %v924_v13, %v907_v7  ;;  %v1119_v28 = vrot.slane %v1114_v20, 4  ;;  %1131 = vst.msk [vmem:[#allocation4 + $0x18] sm:$0xff] %vm1127_vm10, %v2296_v35  ;;  %v2297_v19 = vmov 0.0  }
 0x267   : > { %v922_v6 = vrot.slane %v903_v16, 4  ;;  %v927_v27 = vsel %vm693_vm8, %v919_v5, %v926_v2  ;;  %930 = vst.msk [vmem:[#allocation3 + $0x10] sm:$0xff] %vm803_vm9, %v925_v23  ;;  %v1122_v34 = vsel %vm693_vm8, %v1114_v20, %v1121_v30  ;;  %v2298_v43 = vmov 0  }
 0x268   : > { %v921_v26 = vsel %vm693_vm8, %v920_v18, %v903_v16  ;;  %931 = vst.msk [vmem:[#allocation3 + $0x18] sm:$0xff] %vm803_vm9, %v927_v27  ;;  %v1120_v29 = vsel %vm693_vm8, %v1119_v28, %v1102_v24  ;;  %2091 = vset.pattern.permute.xlu1 %v2298_v43  ;;  %2090 = vset.pattern.permute.xlu0 %v2298_v43 }
 0x269   : > { %928 = vst.msk [vmem:[#allocation3] sm:$0xff] %vm803_vm9, %v921_v26  ;;  %v923_v21 = vsel %vm693_vm8, %v915_v9, %v922_v6  ;;  %1988 = vmatmul.msk.f32.vlgmr.msra.gmra.mxu3 %vm803_vm9, %v1120_v29  ;;  %2092 = vset.pattern.permute.xlu2 %v2298_v43 }
 0x26a   : > { %929 = vst.msk [vmem:[#allocation3 + $0x8] sm:$0xff] %vm803_vm9, %v923_v21 }
 0x26b   : > { %1128 = vst.msk [vmem:[#allocation4] sm:$0xff] %vm1127_vm10, %v2296_v35 }
 0x26c   : > { %1129 = vst.msk [vmem:[#allocation4 + $0x8] sm:$0xff] %vm1127_vm10, %v2296_v35 }
 0x26d   : > { %1130 = vst.msk [vmem:[#allocation4 + $0x10] sm:$0xff] %vm1127_vm10, %v2296_v35  ;;  %v1256_v44 = vld [vmem:[#allocation4 + $0x18] sm:$0xff] }
 0x26e   : > { %v1147_v31 = vld [vmem:[#allocation3 + $0x10] sm:$0xff]  ;;  %1135 = vst.msk [vmem:[#allocation5 + $0x18] sm:$0xff] %vm1127_vm10, %v2297_v19 }
 0x26f   : > { %1437 = vmatpush.msra.mxu0 %v1147_v31  ;;  %v1148_v33 = vld [vmem:[#allocation3 + $0x18] sm:$0xff]  ;;  %1132 = vst.msk [vmem:[#allocation5] sm:$0xff] %vm1127_vm10, %v2297_v19 }
 0x270   : > { %v1145_v32 = vld [vmem:[#allocation3] sm:$0xff]  ;;  %1460 = vmatpush.msrb.mxu1 %v1148_v33  ;;  %1133 = vst.msk [vmem:[#allocation5 + $0x8] sm:$0xff] %vm1127_vm10, %v2297_v19 }
 0x271   : > { %1391 = vmatpush.msra.mxu2 %v1145_v32  ;;  %v1146_v17 = vld [vmem:[#allocation3 + $0x8] sm:$0xff]  ;;  %1990 = vmatmul.msk.f32.vlgmr.msrb.gmra.mxu3 %vm803_vm9, %v1122_v34  ;;  %1134 = vst.msk [vmem:[#allocation5 + $0x10] sm:$0xff] %vm1127_vm10, %v2297_v19 }
 0x272   : > { %1414 = vmatpush.msra.mxu3 %v1146_v17  ;;  %1137 = vst.msk [vmem:[#allocation6] sm:$0xff] %vm803_vm9, %v2297_v19  ;;  %v1253_v54 = vld [vmem:[#allocation4] sm:$0xff] }
 0x273   : > { %1138 = vst.msk [vmem:[#allocation6 + $0x8] sm:$0xff] %vm803_vm9, %v2297_v19  ;;  %v1254_v57 = vld [vmem:[#allocation4 + $0x8] sm:$0xff] }
 0x274   : > { %1139 = vst.msk [vmem:[#allocation6 + $0x10] sm:$0xff] %vm803_vm9, %v2297_v19  ;;  %v1255_v50 = vld [vmem:[#allocation4 + $0x10] sm:$0xff] }
 0x275   : > { %1140 = vst.msk [vmem:[#allocation6 + $0x18] sm:$0xff] %vm803_vm9, %v2297_v19  ;;  %v1320_v30 = vld [vmem:[#allocation5 + $0x18] sm:$0xff] }
 0x278   : > { %v1319_v31 = vld [vmem:[#allocation5 + $0x10] sm:$0xff] }
 0x2df   : > { %v1250_v36 = vpop.f32.mrf.mxu1 }
 0x2e0   : > { %v1266_v37 = vsel %vm803_vm9, %v1250_v36, -inf }
 0x2e1   : > { %1267 = vmax.xlane.f32.xlu2 %v1266_v37  ;;  %v1317_v37 = vld [vmem:[#allocation5] sm:$0xff] }
 0x2e6   : > { %v1224_v38 = vpop.f32.mrf.mxu2 }
 0x2e7   : > { %v1263_v39 = vsel %vm803_vm9, %v1224_v38, -inf }
 0x2e8   : > { %1264 = vmax.xlane.f32.xlu1 %v1263_v39 }
 0x2ec   : > { %v1172_v40 = vpop.f32.mrf.mxu3 }
 0x2ed   : > { %v1257_v41 = vsel %vm803_vm9, %v1172_v40, -inf }
 0x2ee   : > { %1258 = vmax.xlane.f32.xlu2 %v1257_v41 }
 0x2f4   : > { %v1198_v42 = vpop.f32.mrf.mxu3 }
 0x2f5   : > { %v1260_v22 = vsel %vm803_vm9, %v1198_v42, -inf }
 0x2f6   : > { %1261 = vmax.xlane.f32.xlu0 %v1260_v22 }
 0x354   : > { %v1268_v47 = vpop.xlane.xlu2 %1267 }
 0x355   : > { %v1272_v48 = vmax.f32 %v1256_v44, %v1268_v47 }
 0x357   : > { %v1276_v49 = vsub.f32 %v1256_v44, %v1272_v48  ;;  %1476 = vst.msk [vmem:[#allocation4 + $0x18] sm:$0xff] %vm1127_vm10, %v1272_v48 }
 0x359   : > { %v1283_v24 = vmul.f32 1.442695, %v1276_v49 }
 0x35b   : > { %v1265_v51 = vpop.xlane.xlu1 %1264 }
 0x35c   : > { %v1271_v52 = vmax.f32 %v1255_v50, %v1265_v51  ;;  %v1345_v51 = vld [vmem:[#allocation6] sm:$0xff] }
 0x35e   : > { %v1275_v53 = vsub.f32 %v1255_v50, %v1271_v52  ;;  %1475 = vst.msk [vmem:[#allocation4 + $0x10] sm:$0xff] %vm1127_vm10, %v1271_v52  ;;  %1297 = vperm.xlu1 %2091, %v1271_v52  }
 0x360   : > { %v1281_v26 = vmul.f32 1.442695, %v1275_v53 }
 0x361   : > { %v1259_v55 = vpop.xlane.xlu2 %1258 }
 0x362   : > { %v1269_v56 = vmax.f32 %v1253_v54, %v1259_v55 }
 0x364   : > { %v1273_v45 = vsub.f32 %v1253_v54, %v1269_v56  ;;  %1473 = vst.msk [vmem:[#allocation4] sm:$0xff] %vm1127_vm10, %v1269_v56  ;;  %1287 = vperm.xlu0 %2090, %v1269_v56  }
 0x366   : > { %v1277_v23 = vmul.f32 1.442695, %v1273_v45 }
 0x369   : > { %v1262_v58 = vpop.xlane.xlu0 %1261 }
 0x36a   : > { %v1270_v59 = vmax.f32 %v1254_v57, %v1262_v58 }
 0x36c   : > { %v1274_v60 = vsub.f32 %v1254_v57, %v1270_v59  ;;  %1474 = vst.msk [vmem:[#allocation4 + $0x8] sm:$0xff] %vm1127_vm10, %v1270_v59  ;;  %1292 = vperm.xlu2 %2092, %v1270_v59  }
 0x36e   : > { %v1279_v28 = vmul.f32 1.442695, %v1274_v60 }
 0x374   : > { %1302 = vperm.xlu2 %2092, %v1272_v48  }
 0x3c6   : > { %v1293_v46 = vpop.permute.xlu2 %1292 }
 0x3c7   : > { %v1306_v61 = vsub.f32 %v1198_v42, %v1293_v46 }
 0x3c9   : > { %v1311_v62 = vmul.f32 1.442695, %v1306_v61 }
 0x3cb   : > { %2111 = vpow2.f32 %v1311_v62 }
 0x3ce   : > { %v1303_v63 = vpop.permute.xlu2 %1302 }
 0x3cf   : > { %v1308_v0 = vsub.f32 %v1250_v36, %v1303_v63 }
 0x3d0   : > { %v1298_v1 = vpop.permute.xlu1 %1297 }
 0x3d1   : > { %v2112_v3 = vpop.eup %2111  ;;  %v1315_v4 = vmul.f32 1.442695, %v1308_v0  ;;  %v1307_v5 = vsub.f32 %v1224_v38, %v1298_v1  ;;  %v1318_v38 = vld [vmem:[#allocation5 + $0x8] sm:$0xff] }
 0x3d2   : > { %1996 = vmatmul.msk.f32.vlgmr.msra.gmra.mxu3 %vm803_vm9, %v2112_v3  ;;  %v1328_v20 = vsel %vm803_vm9, %v2112_v3, 0.0 }
 0x3d3   : > { %2113 = vpow2.f32 %v1315_v4  ;;  %v1313_v7 = vmul.f32 1.442695, %v1307_v5 }
 0x3d5   : > { %2115 = vpow2.f32 %v1313_v7 }
 0x3d6   : > { %v1288_v9 = vpop.permute.xlu0 %1287 }
 0x3d7   : > { %v1305_v10 = vsub.f32 %v1172_v40, %v1288_v9 }
 0x3d9   : > { %v2114_v11 = vpop.eup %2113  ;;  %v1309_v12 = vmul.f32 1.442695, %v1305_v10 }
 0x3da   : > { %1998 = vmatmul.msk.f32.vlgmr.msrb.gmra.mxu1 %vm803_vm9, %v2114_v11  ;;  %v1334_v13 = vsel %vm803_vm9, %v2114_v11, 0.0  ;;  %v1348_v11 = vld [vmem:[#allocation6 + $0x18] sm:$0xff] }
 0x3db   : > { %v2116_v15 = vpop.eup %2115  ;;  %2117 = vpow2.f32 %v1309_v12  ;;  %1335 = vadd.xlane.f32.xlu2 %v1334_v13 }
 0x3dc   : > { %1997 = vmatmul.msk.f32.vlgmr.msra.gmra.mxu0 %vm803_vm9, %v2116_v15  ;;  %v1331_v16 = vsel %vm803_vm9, %v2116_v15, 0.0  ;;  %2119 = vpow2.f32 %v1277_v23 }
 0x3dd   : > { %1332 = vadd.xlane.f32.xlu0 %v1331_v16  ;;  %2121 = vpow2.f32 %v1283_v24  ;;  %v1347_v24 = vld [vmem:[#allocation6 + $0x10] sm:$0xff] }
 0x3de   : > { %2123 = vpow2.f32 %v1281_v26 }
 0x3df   : > { %2125 = vpow2.f32 %v1279_v28 }
 0x3e1   : > { %v2118_v18 = vpop.eup %2117 }
 0x3e2   : > { %1995 = vmatmul.msk.f32.vlgmr.msra.gmra.mxu2 %vm803_vm9, %v2118_v18  ;;  %v1325_v2 = vsel %vm803_vm9, %v2118_v18, 0.0  ;;  %v2120_v6 = vpop.eup %2119 }
 0x3e3   : > { %1326 = vadd.xlane.f32.xlu1 %v1325_v2  ;;  %v2122_v27 = vpop.eup %2121  ;;  %v1321_v39 = vmul.f32 %v2120_v6, %v1317_v37 }
 0x3e4   : > { %v2124_v21 = vpop.eup %2123  ;;  %v1324_v32 = vmul.f32 %v2122_v27, %v1320_v30 }
 0x3e5   : > { %1329 = vadd.xlane.f32.xlu0 %v1328_v20  ;;  %v2126_v29 = vpop.eup %2125  ;;  %v1323_v17 = vmul.f32 %v2124_v21, %v1319_v31 }
 0x3e6   : > { %v1322_v42 = vmul.f32 %v2126_v29, %v1318_v38 }
 0x3f3   : > { %1351 = vperm.xlu2 %2092, %v2120_v6  }
 0x3f9   : > { %1366 = vperm.xlu0 %2090, %v2122_v27  }
 0x3fc   : > { %1361 = vperm.xlu1 %2091, %v2124_v21  }
 0x404   : > { %1356 = vperm.xlu1 %2091, %v2126_v29  }
 0x44e   : > { %v1336_v33 = vpop.xlane.xlu2 %1335 }
 0x44f   : > { %v1340_v34 = vadd.f32 %v1336_v33, %v1324_v32 }
 0x450   : > { %v1333_v35 = vpop.xlane.xlu0 %1332 }
 0x451   : > { %1344 = vst.msk [vmem:[#allocation5 + $0x18] sm:$0xff] %vm1127_vm10, %v1340_v34  ;;  %v1339_v36 = vadd.f32 %v1333_v35, %v1323_v17 }
 0x453   : > { %1343 = vst.msk [vmem:[#allocation5 + $0x10] sm:$0xff] %vm1127_vm10, %v1339_v36 }
 0x456   : > { %v1327_v40 = vpop.xlane.xlu1 %1326  ;;  %v1352_v52 = vpop.permute.xlu2 %1351 }
 0x457   : > { %v1337_v41 = vadd.f32 %v1327_v40, %v1321_v39  ;;  %v1369_v57 = vmul.f32 %v1352_v52, %v1345_v51  ;;  %v1462_v28 = vpop.f32.mrf.mxu1 }
 0x458   : > { %v1330_v22 = vpop.xlane.xlu0 %1329  ;;  %v1480_v19 = vld [vmem:[#allocation5 + $0x18] sm:$0xff] }
 0x459   : > { %1341 = vst.msk [vmem:[#allocation5] sm:$0xff] %vm1127_vm10, %v1337_v41  ;;  %v1338_v43 = vadd.f32 %v1330_v22, %v1322_v42  ;;  %2127 = vrcp.f32 %v1480_v19  ;;  %v1535_v56 = vand.u32 2147483647, %v1480_v19  ;;  %v1537_v45 = vand.u32 2147483648, %v1480_v19  ;;  %v1439_v35 = vpop.f32.mrf.mxu0  ;;  %v1346_v22 = vld [vmem:[#allocation6 + $0x8] sm:$0xff] }
 0x45a   : > { %v1479_v44 = vld [vmem:[#allocation5 + $0x10] sm:$0xff]  ;;  %vm1531_vm12 = vweird.f32 %v1480_v19 }
 0x45b   : > { %1342 = vst.msk [vmem:[#allocation5 + $0x8] sm:$0xff] %vm1127_vm10, %v1338_v43  ;;  %2129 = vrcp.f32 %v1479_v44  ;;  %v1520_v46 = vand.u32 2147483647, %v1479_v44  ;;  %v1522_v61 = vand.u32 2147483648, %v1479_v44  ;;  %vm1536_vm15 = vcmp.eq.f32.partialorder %v1535_v56, 8.507059e+37 }
 0x45c   : > { %v1538_v3 = vor.u32 1.1754944e-38, %v1537_v45  ;;  %vm1516_vm1 = vweird.f32 %v1479_v44 }
 0x45d   : > { %v1523_v12 = vor.u32 1.1754944e-38, %v1522_v61  ;;  %vm1521_vm3 = vcmp.eq.f32.partialorder %v1520_v46, 8.507059e+37 }
 0x45f   : > { %v2128_v47 = vpop.eup %2127 }
 0x460   : > { %v1527_v48 = vmul.f32 %v2128_v47, %v1480_v19  ;;  %v2777_v49 = vld [vmem:[#allocation5] sm:$0xff]  ;;  %vm1532_vm11 = vweird.f32 %v2128_v47 }
 0x461   : > { %v2130_v50 = vpop.eup %2129  ;;  %2131 = vrcp.f32 %v2777_v49  ;;  %vm1533_vm14 = vmor %vm1531_vm12, %vm1532_vm11  ;;  %v1490_v20 = vand.u32 2147483647, %v2777_v49  ;;  %v1492_v23 = vand.u32 2147483648, %v2777_v49  ;;  %vm1486_vm5 = vweird.f32 %v2777_v49 }
 0x462   : > { %v1528_v53 = vsub.f32 1.0, %v1527_v48  ;;  %v1512_v54 = vmul.f32 %v2130_v50, %v1479_v44  ;;  %v2780_v55 = vld [vmem:[#allocation5 + $0x8] sm:$0xff]  ;;  %vm1517_vm13 = vweird.f32 %v2130_v50  ;;  %v1416_v44 = vpop.f32.mrf.mxu3 }
 0x463   : > { %2133 = vrcp.f32 %v2780_v55  ;;  %vm1518_vm2 = vmor %vm1516_vm1, %vm1517_vm13  ;;  %v1505_v21 = vand.u32 2147483647, %v2780_v55  ;;  %v1507_v29 = vand.u32 2147483648, %v2780_v55  ;;  %v1493_v17 = vor.u32 1.1754944e-38, %v1492_v23 }
 0x464   : > { %v1529_v58 = vmul.f32 %v2128_v47, %v1528_v53  ;;  %v1513_v59 = vsub.f32 1.0, %v1512_v54  ;;  %vm1491_vm10 = vcmp.eq.f32.partialorder %v1490_v20, 8.507059e+37  ;;  %vm1501_vm11 = vweird.f32 %v2780_v55 }
 0x465   : > { %v1393_v60 = vpop.f32.mrf.mxu2  ;;  %v1508_v40 = vor.u32 1.1754944e-38, %v1507_v29  ;;  %vm1506_vm13 = vcmp.eq.f32.partialorder %v1505_v21, 8.507059e+37 }
 0x466   : > { %v1465_v62 = vadd.f32 %v1393_v60, %v1369_v57  ;;  %v1530_v63 = vadd.f32 %v2128_v47, %v1529_v58  ;;  %v1514_v0 = vmul.f32 %v2130_v50, %v1513_v59 }
 0x467   : > { %v2132_v1 = vpop.eup %2131 }
 0x468   : > { %1469 = vst.msk [vmem:[#allocation6] sm:$0xff] %vm803_vm9, %v1465_v62  ;;  %v1534_v4 = vsel %vm1533_vm14, %v2128_v47, %v1530_v63  ;;  %v1515_v5 = vadd.f32 %v2130_v50, %v1514_v0  ;;  %v1482_v7 = vmul.f32 %v2132_v1, %v2777_v49  ;;  %vm1487_vm4 = vweird.f32 %v2132_v1 }
 0x469   : > { %v2134_v9 = vpop.eup %2133  ;;  %v1539_v10 = vsel %vm1536_vm15, %v1538_v3, %v1534_v4  ;;  %vm1488_vm7 = vmor %vm1486_vm5, %vm1487_vm4  ;;  %vm1694_vm14 = vcmask 195584  }
 0x46a   : > { %1562 = vperm.xlu1 %2091, %v1539_v10   ;;  %v1519_v13 = vsel %vm1518_vm2, %v2130_v50, %v1515_v5  ;;  %v1483_v15 = vsub.f32 1.0, %v1482_v7  ;;  %v1497_v16 = vmul.f32 %v2134_v9, %v2780_v55  ;;  %vm1502_vm6 = vweird.f32 %v2134_v9 }
 0x46b   : > { %v1367_v18 = vpop.permute.xlu0 %1366  ;;  %v1524_v2 = vsel %vm1521_vm3, %v1523_v12, %v1519_v13  ;;  %vm1503_vm12 = vmor %vm1501_vm11, %vm1502_vm6 }
 0x46c   : > { %v1372_v26 = vmul.f32 %v1367_v18, %v1348_v11  ;;  %1557 = vperm.xlu0 %2090, %v1524_v2   ;;  %v1484_v6 = vmul.f32 %v2132_v1, %v1483_v15  ;;  %v1498_v27 = vsub.f32 1.0, %v1497_v16 }
 0x46e   : > { %v1362_v30 = vpop.permute.xlu1 %1361  ;;  %v1468_v31 = vadd.f32 %v1462_v28, %v1372_v26  ;;  %v1485_v32 = vadd.f32 %v2132_v1, %v1484_v6  ;;  %v1499_v33 = vmul.f32 %v2134_v9, %v1498_v27 }
 0x46f   : > { %v1371_v34 = vmul.f32 %v1362_v30, %v1347_v24  ;;  %v1541_v49 = vld [vmem:[#allocation6] sm:$0xff] }
 0x470   : > { %1472 = vst.msk [vmem:[#allocation6 + $0x18] sm:$0xff] %vm803_vm9, %v1468_v31  ;;  %v1489_v36 = vsel %vm1488_vm7, %v2132_v1, %v1485_v32  ;;  %v1500_v37 = vadd.f32 %v2134_v9, %v1499_v33 }
 0x471   : > { %v1467_v38 = vadd.f32 %v1439_v35, %v1371_v34  ;;  %v1494_v39 = vsel %vm1491_vm10, %v1493_v17, %v1489_v36 }
 0x472   : > { %1547 = vperm.xlu2 %2092, %v1494_v39   ;;  %v1504_v41 = vsel %vm1503_vm12, %v2134_v9, %v1500_v37 }
 0x473   : > { %1471 = vst.msk [vmem:[#allocation6 + $0x10] sm:$0xff] %vm803_vm9, %v1467_v38  ;;  %v1509_v42 = vsel %vm1506_vm13, %v1508_v40, %v1504_v41 }
 0x474   : > { %1552 = vperm.xlu0 %2090, %v1509_v42  }
 0x476   : > { %v1357_v19 = vpop.permute.xlu1 %1356 }
 0x477   : > { %v1370_v43 = vmul.f32 %v1357_v19, %v1346_v22  ;;  %v1544_v56 = vld [vmem:[#allocation6 + $0x18] sm:$0xff] }
 0x479   : > { %v1466_v47 = vadd.f32 %v1416_v44, %v1370_v43 }
 0x47a   : > { %v1543_v50 = vld [vmem:[#allocation6 + $0x10] sm:$0xff] }
 0x47b   : > { %1470 = vst.msk [vmem:[#allocation6 + $0x8] sm:$0xff] %vm803_vm9, %v1466_v47 }
 0x482   : > { %v1542_v46 = vld [vmem:[#allocation6 + $0x8] sm:$0xff] }
 0x4cc   : > { %v1548_v48 = vpop.permute.xlu2 %1547 }
 0x4cd   : > { %v1565_v52 = vmul.f32 %v1548_v48, %v1541_v49 }
 0x4cf   : > { %v1571_v45 = vrot.slane %v1565_v52, 4 }
 0x4dc   : > { %v1563_v54 = vpop.permute.xlu1 %1562 }
 0x4dd   : > { %v1568_v57 = vmul.f32 %v1563_v54, %v1544_v56 }
 0x4de   : > { %v1558_v51 = vpop.permute.xlu0 %1557 }
 0x4df   : > { %v1567_v53 = vmul.f32 %v1558_v51, %v1543_v50  ;;  %v1581_v62 = vrot.slane %v1568_v57, 4 }
 0x4e1   : > { %v1569_v55 = vrot.slane %v1567_v53, 4  ;;  %v1572_v59 = vsel %vm693_vm8, %v1567_v53, %v1571_v45 }
 0x4e2   : > { %v1580_v0 = vperm.slane %v1572_v59, %v2579_v14  ;;  %v1699_v59 = vld [vmem:[%s2986_s9 + $0x18] sm:$0xff] }
 0x4e3   : > { %v1570_v58 = vsel %vm693_vm8, %v1569_v55, %v1565_v52  ;;  %1719 = vmatpush.msrb.mxu2 %v1699_v59  ;;  %v1839_v59 = vld [vmem:[%s2992_s15 + $0x20] sm:$0xff] }
 0x4e4   : > { %v1576_v60 = vperm.slane %v1570_v58, %v2579_v14  ;;  %v1607_v9 = vrot.slane %v1580_v0, 4 }
 0x4e6   : > { %v1553_v61 = vpop.permute.xlu0 %1552  ;;  %v1595_v4 = vrot.slane %v1576_v60, 4 }
 0x4e7   : > { %v1566_v63 = vmul.f32 %v1553_v61, %v1542_v46  ;;  %v1696_v46 = vld [vmem:[%s2986_s9] sm:$0xff] }
 0x4e9   : > { %v1582_v1 = vsel %vm693_vm8, %v1581_v62, %v1566_v63  ;;  %v1583_v3 = vrot.slane %v1566_v63, 4 }
 0x4ea   : > { %v1588_v5 = vperm.slane %v1582_v1, %v2579_v14 }
 0x4eb   : > { %v1584_v7 = vsel %vm693_vm8, %v1568_v57, %v1583_v3 }
 0x4ec   : > { %v1592_v10 = vperm.slane %v1584_v7, %v2579_v14  ;;  %v1593_v11 = vrot.slane %v1588_v5, 4  ;;  %v1596_v12 = vsel %vm693_vm8, %v1588_v5, %v1595_v4  ;;  %v2100_v4 = vld [vmem:[%s2987_s10] ss:$0 sm:$0xff] }
 0x4ed   : > { %v1604_v13 = vperm.slane %v1596_v12, %v2587_v25 }
 0x4ee   : > { %v1594_v15 = vsel %vm693_vm8, %v1593_v11, %v1576_v60  ;;  %v1605_v16 = vrot.slane %v1592_v10, 4  ;;  %v1608_v18 = vsel %vm693_vm8, %v1592_v10, %v1607_v9  ;;  %v1697_v60 = vld [vmem:[%s2986_s9 + $0x8] sm:$0xff]  ;;  %v2139_v9 = vld [vmem:[#allocation7] sm:$0xff] }
 0x4ef   : > { %v1600_v2 = vperm.slane %v1594_v15, %v2587_v25  ;;  %v1616_v20 = vperm.slane %v1608_v18, %v2587_v25  ;;  %v1619_v23 = vrot.slane %v1604_v13, 4 }
 0x4f0   : > { %v1606_v24 = vsel %vm693_vm8, %v1605_v16, %v1580_v0 }
 0x4f1   : > { %v1612_v26 = vperm.slane %v1606_v24, %v2587_v25  ;;  %v1617_v6 = vrot.slane %v1600_v2, 4  ;;  %v1620_v27 = vsel %vm693_vm8, 0.0, %v1619_v23  ;;  %v1623_v28 = vrot.slane %v1616_v20, 4  ;;  %v1762_v20 = vld [vmem:[%s2990_s13 + $0x10] sm:$0xff]  ;;  %v1760_v24 = vld [vmem:[%s2990_s13] sm:$0xff] }
 0x4f2   : > { %v1625_v21 = vsel %vm693_vm8, %v1619_v23, %v1600_v2  ;;  %v1630_v29 = vrot.slane %v1620_v27, 4  ;;  %v1763_v2 = vld [vmem:[%s2990_s13 + $0x18] sm:$0xff]  ;;  %v1761_v23 = vld [vmem:[%s2990_s13 + $0x8] sm:$0xff] }
 0x4f3   : > { %v1624_v30 = vsel %vm693_vm8, 0.0, %v1623_v28  ;;  %v1618_v31 = vsel %vm693_vm8, 0.0, %v1617_v6  ;;  %v1621_v32 = vrot.slane %v1612_v26, 4  ;;  %v1629_v33 = vperm.slane %v1625_v21, %v2579_v14  ;;  %1783 = vmatpush.msrb.mxu3 %v1763_v2 }
 0x4f4   : > { %v1641_v34 = vrot.slane %v1624_v30, 4  ;;  %v1631_v17 = vsel %vm693_vm8, %v1630_v29, %v1618_v31  ;;  %v1636_v35 = vsel %vm693_vm8, %v1623_v28, %v1612_v26 }
 0x4f5   : > { %v1622_v36 = vsel %vm693_vm8, 0.0, %v1621_v32  ;;  %v1635_v37 = vperm.slane %v1631_v17, %v2579_v14  ;;  %v1640_v38 = vperm.slane %v1636_v35, %v2579_v14  ;;  %v1649_v39 = vrot.slane %v1629_v33, 4  ;;  %1784 = vmatpush.msrb.mxu3 %v1762_v20 }
 0x4f6   : > { %v1642_v40 = vsel %vm693_vm8, %v1641_v34, %v1622_v36 }
 0x4f7   : > { %v1646_v41 = vperm.slane %v1642_v40, %v2579_v14  ;;  %v1650_v42 = vsel %vm693_vm8, %v1635_v37, %v1649_v39  ;;  %v1661_v22 = vrot.slane %v1640_v38, 4  ;;  %v1647_v19 = vrot.slane %v1635_v37, 4  ;;  %1785 = vmatpush.msrb.mxu3 %v1761_v23  ;;  %v1850_v37 = vld [vmem:[%s2992_s15 + $0x78] sm:$0xff]  ;;  %v1849_v39 = vld [vmem:[%s2992_s15 + $0x70] sm:$0xff]  ;;  %v1848_v40 = vld [vmem:[%s2992_s15 + $0x68] sm:$0xff] }
 0x4f8   : > { %v1658_v43 = vperm.slane %v1650_v42, %v2587_v25  ;;  %1855 = vmatpush.msrb.mxu0 %v1850_v37 }
 0x4f9   : > { %v1662_v44 = vsel %vm693_vm8, %v1646_v41, %v1661_v22  ;;  %v1648_v47 = vsel %vm693_vm8, %v1647_v19, %v1629_v33  ;;  %v1659_v48 = vrot.slane %v1646_v41, 4  ;;  %1786 = vmatpush.msrb.mxu3 %v1760_v24  ;;  %v2101_v33 = vld [vmem:[%s2988_s11] ss:$0 sm:$0xff] }
 0x4fa   : > { %v1670_v49 = vperm.slane %v1662_v44, %v2587_v25  ;;  %v1677_v50 = vrot.slane %v1658_v43, 4  ;;  %v1654_v51 = vperm.slane %v1648_v47, %v2587_v25  ;;  %1856 = vmatpush.msrb.mxu0 %v1849_v39  ;;  %v1847_v22 = vld [vmem:[%s2992_s15 + $0x60] sm:$0xff]  ;;  %v1845_v47 = vld [vmem:[%s2992_s15 + $0x50] sm:$0xff] }
 0x4fb   : > { %v1660_v52 = vsel %vm693_vm8, %v1659_v48, %v1640_v38  ;;  %v2103_v38 = vld [vmem:[%s3033_s26] ss:$0 sm:$0xff]  ;;  %s1983_s26 = sshll.u32 %s575_s24, 3 }
 0x4fc   : > { %v1678_v14 = vsel %vm693_vm8, %v1670_v49, %v1677_v50  ;;  %v1675_v53 = vrot.slane %v1670_v49, 4  ;;  %v1666_v54 = vperm.slane %v1660_v52, %v2587_v25  ;;  %v1673_v55 = vrot.slane %v1654_v51, 4  ;;  %v1698_v25 = vld [vmem:[%s2986_s9 + $0x10] sm:$0xff]  ;;  %1857 = vmatpush.msrb.mxu0 %v1848_v40  ;;  %v1844_v49 = vld [vmem:[%s2992_s15 + $0x48] sm:$0xff]  ;;  %v1843_v52 = vld [vmem:[%s2992_s15 + $0x40] sm:$0xff]  ;;  %s577_s23 = scalar_lea.vmem [#allocation12], %s1983_s26 }
 0x4fd   : > { %1688 = vrot.lane.b32.xlu0 %v1678_v14, %s2299_s27  ;;  %1720 = vmatpush.msrb.mxu2 %v1698_v25  ;;  %s1891_s18 = sshll.u32 %s577_s23, 4  ;;  %s1892_s18 = int_to_ptr.vmem [resolvable:$true] %s1891_s18 }
 0x4fe   : > { %v1676_v56 = vsel %vm693_vm8, %v1675_v53, %v1658_v43  ;;  %v1671_v45 = vrot.slane %v1666_v54, 4  ;;  %v1674_v57 = vsel %vm693_vm8, %v1666_v54, %v1673_v55  ;;  %1858 = vmatpush.msrb.mxu0 %v1847_v22  ;;  %v1846_v43 = vld [vmem:[%s2992_s15 + $0x58] sm:$0xff] }
 0x4ff   : > { %1684 = vrot.lane.b32.xlu1 %v1676_v56, %s2300_s28  ;;  %1680 = vrot.lane.b32.xlu2 %v1674_v57, %s2301_s29  ;;  %v1842_v54 = vld [vmem:[%s2992_s15 + $0x38] sm:$0xff]  ;;  %v1840_v57 = vld [vmem:[%s2992_s15 + $0x28] sm:$0xff]  ;;  %s3038_s29 = sld [smem:[#allocation30_spill]] }
 0x500   : > { %v1672_v58 = vsel %vm693_vm8, %v1671_v45, %v1654_v51  ;;  %1721 = vmatpush.msrb.mxu2 %v1697_v60  ;;  %vm1692_vm8 = vcmask 130048   ;;  %1859 = vmatpush.msrb.mxu0 %v1846_v43  ;;  %v1841_v45 = vld [vmem:[%s2992_s15 + $0x30] sm:$0xff] }
 0x502   : > { %1722 = vmatpush.msrb.mxu2 %v1696_v46  ;;  %1860 = vmatpush.msrb.mxu0 %v1845_v47  ;;  %v1838_v46 = vld [vmem:[%s2992_s15 + $0x18] sm:$0xff] }
 0x504   : > { %1861 = vmatpush.msrb.mxu0 %v1844_v49 }
 0x505   : > { %s3039_s1 = smov %s3038_s29  ;;  %s1889_s22 = scalar_lea.hbm %s3038_s29, %s3037_s25 }
 0x506   : > { %1862 = vmatpush.msrb.mxu0 %v1843_v52  ;;  %s1893_s0 = sshll.u32 %s1889_s22, 4  ;;  %s2220_s26 = scalar_lea.hbm %s3039_s1, 16  ;;  %s1894_s0 = int_to_ptr.hbm [resolvable:$true] %s1893_s0 }
 0x507   : > { %s2214_s19 = sshra.s32 %s1894_s0, 4  ;;  %s2215_s19 = int_to_ptr.hbm [resolvable:$true] %s2214_s19 }
 0x508   : > { %1863 = vmatpush.msrb.mxu0 %v1842_v54  ;;  %s2216_s21 = scalar_lea.hbm %s2215_s19, 8  ;;  %p2221_p12 = scmp.lt.s32.totalorder %s2215_s19, %s3039_s1 }
 0x509   : > { %p2217_p2 = scmp.ne.s32.totalorder %s2215_s19, %s2216_s21  ;;  %p2222_p0 = scmp.lt.s32.totalorder %s2220_s26, %s2216_s21 }
 0x50a   : > { %1864 = vmatpush.msrb.mxu0 %v1841_v45 }
 0x50b   : > { %p2218_p4 = pnand %p2217_p2, %p2444_p8  ;;  %p2223_p1 = por %p2222_p0, %p2221_p12 }
 0x50c   : > { %1865 = vmatpush.msrb.mxu0 %v1840_v57 }
 0x50d   : > { %p2219_p9 = pneg %p2218_p4 }
 0x50e   : > { %1866 = vmatpush.msrb.mxu0 %v1839_v59 }
 0x50f   : > { %p2224_p3 = pnand %p2223_p1, %p2219_p9 }
 0x510   : > { %1867 = vmatpush.msrb.mxu0 %v1838_v46 }
 0x559   : > { %v1681_v61 = vpop.permute.xlu2 %1680 }
 0x55a   : > { %v1691_v62 = vsel %vm803_vm9, %v1672_v58, %v1681_v61 }
 0x56f   : > { %v1689_v0 = vpop.permute.xlu0 %1688 }
 0x571   : > { %v1685_v63 = vpop.permute.xlu1 %1684 }
 0x572   : > { %v1693_v1 = vsel %vm1692_vm8, %v1691_v62, %v1685_v63  ;;  %v1837_v62 = vld [vmem:[%s2992_s15 + $0x10] sm:$0xff] }
 0x573   : > { %v1695_v3 = vsel %vm1694_vm14, %v1693_v1, %v1689_v0  ;;  %v1836_v1 = vld [vmem:[%s2992_s15 + $0x8] sm:$0xff]  ;;  %1868 = vmatpush.msrb.mxu0 %v1837_v62 }
 0x574   : > { %1999 = vmatmul.msk.f32.vlgmr.msrb.gmra.mxu2 %vm585_vm0, %v1695_v3 }
 0x575   : > { %1869 = vmatpush.msrb.mxu0 %v1836_v1 }
 0x5f7   : > { %v1724_v5 = vpop.f32.mrf.mxu2 }
 0x5f8   : > { %v1725_v7 = vadd.f32 %v2100_v4, %v1724_v5  ;;  %v1835_v4 = vld [vmem:[%s2992_s15] sm:$0xff] }
 0x5f9   : > { %1870 = vmatpush.msrb.mxu0 %v1835_v4 }
 0x5fa   : > { %v2852_v10 = vadd.f32 %v2139_v9, %v1725_v7 }
 0x5fc   : > { %v1730_v11 = vsel %vm585_vm0, %v2852_v10, 0.0 }
 0x5fd   : > { %1731 = vadd.xlane.f32.xlu2 %v1730_v11 }
 0x670   : > { %v1732_v12 = vpop.xlane.xlu2 %1731 }
 0x671   : > { %v1733_v13 = vmul.f32 %v1732_v12, %v2507_v8 }
 0x673   : > { %v1734_v15 = vsub.f32 %v2852_v10, %v1733_v13 }
 0x675   : > { %v1735_v16 = vmul.f32 %v1734_v15, %v1734_v15 }
 0x677   : > { %v1736_v18 = vsel %vm585_vm0, %v1735_v16, 0.0 }
 0x678   : > { %1737 = vadd.xlane.f32.xlu1 %v1736_v18 }
 0x6eb   : > { %v1738_v26 = vpop.xlane.xlu1 %1737 }
 0x6ec   : > { %v1739_v6 = vmul.f32 %v1738_v26, %v2507_v8  ;;  %v2102_v8 = vld [vmem:[%s2989_s12] ss:$0 sm:$0xff] }
 0x6ee   : > { %v1740_v27 = vadd.f32 1e-06, %v1739_v6 }
 0x6f0   : > { %2135 = vrsqrt.f32 %v1740_v27  ;;  %vm1747_vm15 = vweird.f32 %v1740_v27 }
 0x6f6   : > { %v2136_v28 = vpop.eup %2135 }
 0x6f7   : > { %v1742_v21 = vmul.f32 %v2136_v28, %v1740_v27  ;;  %vm1748_vm9 = vweird.f32 %v2136_v28 }
 0x6f8   : > { %vm1749_vm1 = vmor %vm1747_vm15, %vm1748_vm9 }
 0x6f9   : > { %v1743_v29 = vmul.f32 %v2136_v28, %v1742_v21 }
 0x6fb   : > { %v1744_v30 = vmul.f32 0.5, %v1743_v29 }
 0x6fd   : > { %v1745_v31 = vsub.f32 1.5, %v1744_v30 }
 0x6ff   : > { %v1746_v32 = vmul.f32 %v2136_v28, %v1745_v31 }
 0x701   : > { %v1750_v34 = vsel %vm1749_vm1, %v2136_v28, %v1746_v32 }
 0x702   : > { %v1751_v17 = vmul.f32 %v1750_v34, %v1734_v15  ;;  %v2104_v34 = vld [vmem:[%s3036_s17] ss:$0 sm:$0xff] }
 0x704   : > { %v1755_v35 = vmul.f32 %v2101_v33, %v1751_v17 }
 0x706   : > { %v1759_v36 = vadd.f32 %v2102_v8, %v1755_v35 }
 0x708   : > { %2000 = vmatmul.msk.f32.vlgmr.msrb.gmra.mxu3 %vm585_vm0, %v1759_v36 }
 0x78b   : > { %v1788_v41 = vpop.f32.mrf.mxu3 }
 0x78c   : > { %v2891_v42 = vadd.f32 %v2103_v38, %v1788_v41 }
 0x78e   : > { %v1792_v19 = vmul.f32 0.70710677, %v2891_v42  ;;  %v1791_v31 = vmul.f32 0.5, %v2891_v42 }
 0x790   : > { %v1793_v44 = vmul.f32 %v1792_v19, %v1792_v19 }
 0x792   : > { %v1794_v48 = vmin.f32 %v1793_v44, 16.0 }
 0x794   : > { %v1795_v50 = vmul.f32 2.1237322e-06, %v1794_v48  ;;  %v1806_v51 = vmul.f32 3.8918573e-05, %v1794_v48 }
 0x796   : > { %v1796_v14 = vadd.f32 0.00028619796, %v1795_v50  ;;  %v1807_v53 = vadd.f32 0.001143296, %v1806_v51 }
 0x798   : > { %v1797_v55 = vmul.f32 %v1796_v14, %v1794_v48  ;;  %v1808_v56 = vmul.f32 %v1807_v53, %v1794_v48 }
 0x79a   : > { %v1809_v58 = vadd.f32 0.014752088, %v1808_v56  ;;  %v1798_v25 = vadd.f32 0.0036580483, %v1797_v55 }
 0x79c   : > { %v1810_v60 = vmul.f32 %v1809_v58, %v1794_v48  ;;  %v1799_v63 = vmul.f32 %v1798_v25, %v1794_v48 }
 0x79e   : > { %v1811_v61 = vadd.f32 0.112945676, %v1810_v60  ;;  %v1800_v5 = vadd.f32 0.05243302, %v1799_v63 }
 0x7a0   : > { %v1812_v0 = vmul.f32 %v1811_v61, %v1794_v48  ;;  %v1801_v11 = vmul.f32 %v1800_v5, %v1794_v48 }
 0x7a2   : > { %v1813_v3 = vadd.f32 0.4994258, %v1812_v0  ;;  %v1802_v12 = vadd.f32 0.18741608, %v1801_v11 }
 0x7a4   : > { %v1814_v7 = vmul.f32 %v1813_v3, %v1794_v48  ;;  %v1803_v15 = vmul.f32 %v1802_v12, %v1794_v48 }
 0x7a6   : > { %v1815_v9 = vadd.f32 1.0, %v1814_v7  ;;  %v1804_v20 = vadd.f32 1.1283791, %v1803_v15 }
 0x7a8   : > { %2137 = vrcp.f32 %v1815_v9  ;;  %v1827_v2 = vand.u32 2147483648, %v1815_v9  ;;  %v1825_v24 = vand.u32 2147483647, %v1815_v9  ;;  %vm1821_vm3 = vweird.f32 %v1815_v9 }
 0x7a9   : > { %v1805_v27 = vmul.f32 %v1804_v20, %v1792_v19 }
 0x7aa   : > { %v1828_v6 = vor.u32 1.1754944e-38, %v1827_v2  ;;  %vm1826_vm5 = vcmp.eq.f32.partialorder %v1825_v24, 8.507059e+37 }
 0x7ae   : > { %v2138_v13 = vpop.eup %2137 }
 0x7af   : > { %v1817_v16 = vmul.f32 %v2138_v13, %v1815_v9  ;;  %vm1822_vm2 = vweird.f32 %v2138_v13 }
 0x7b0   : > { %vm1823_vm4 = vmor %vm1821_vm3, %vm1822_vm2 }
 0x7b1   : > { %v1818_v18 = vsub.f32 1.0, %v1817_v16 }
 0x7b3   : > { %v1819_v23 = vmul.f32 %v2138_v13, %v1818_v18 }
 0x7b5   : > { %v1820_v26 = vadd.f32 %v2138_v13, %v1819_v23 }
 0x7b7   : > { %v1824_v28 = vsel %vm1823_vm4, %v2138_v13, %v1820_v26 }
 0x7b8   : > { %v1829_v21 = vsel %vm1826_vm5, %v1828_v6, %v1824_v28 }
 0x7b9   : > { %v1830_v29 = vmul.f32 %v1829_v21, %v1805_v27 }
 0x7bb   : > { %v2001_v30 = vclamps-f32 %v1830_v29, 1.0 }
 0x7bd   : > { %v1833_v32 = vadd.f32 1.0, %v2001_v30 }
 0x7bf   : > { %v1834_v33 = vmul.f32 %v1833_v32, %v1791_v31 }
 0x7c1   : > { %1871 = vmatmul.f32.vlgmr.msrb.gmra.mxu0 %v1834_v33 }
 0x83e   : > { %v1872_v17 = vpop.f32.mrf.mxu0 }
 0x83f   : > { %v1873_v8 = vadd.f32 %v2104_v34, %v1872_v17 }
 0x841   : > { %v1875_v35 = vadd.f32 %v1873_v8, %v2852_v10 }
 0x843   : > { %1876 = vst.msk [vmem:[%s577_s23] sm:$0xff] %vm585_vm0, %v1875_v35 }
 0x844   : > { %2227 = shalt.err (!%p2224_p3)
}
 0x845   : > { %2012 = dma.vmem_to_hbm [thread:$0]  (%p2444_p8), %s1892_s18, 128, %s1894_s0, %s1878_s16  }
 0x846 PF: > { %s3041_s24 = sld [smem:[#allocation21_spill]] }
 0x847   : > { %s3042_s28 = sld [smem:[#allocation16_spill]] }
 0x848   : > { %s3043_s29 = sld [smem:[#allocation24_spill]] }
 0x84c   : > { %p2027_p5 = scmp.ge.s32.totalorder %s3041_s24, 2 }
 0x84d   : > { %s1905_s22 = sand.u32 1, %s3042_s28  }
 0x84e   : > { %p3044_p6 = scmp.ne.s32.totalorder %s3043_s29, 0  ;;  %s1906_s23 = scalar_lea.sflag [#allocation9], %s1905_s22 }
 0x850   : > { %p2022_p7 = pnand %p2027_p5, %p3044_p6 }
 0x852   : > { %p2023_p10 = pneg %p2022_p7 }
 0x854   : > { %2261 = dma.done.wait (%p2023_p10), %s1906_s23, 128  }
 0x855   : > { %2263 = vsyncadd (%p2023_p10), %s1906_s23, 4294967168  ;;  %s32_s29 = sadd.s32 1, %s3041_s24   ;;  %s3045_s24 = sld [smem:[#allocation17_spill]] }
 0x856   : > { %p29_p11 = scmp.ge.s32.totalorder %s32_s29, 4   ;;  %s3046_s25 = sld [smem:[#allocation18_spill]] }
 0x857   : > { %s3047_s26 = sld [smem:[#allocation25_spill]] }
 0x858   : > { %s3048_s27 = sld [smem:[#allocation20_spill]]  ;;  %31 = sbr.rel (!%p29_p11) target bundleno = 12 (0xc), region = 135 }
 0x859   : > { %s3049_s28 = sld [smem:[#allocation22_spill]] }
 0x85d   :  { %1912 = vsyncpa [#allocation8], 1 }
 0x85e   :  { %1914 = vsyncpa [#allocation8 + $0x1], 1 }
 0x85f   :  { %1915 = vsyncpa [#allocation11], 1 }
 0x860   :  { %1916 = vsyncpa [#allocation9], 1 }
 0x861   :  { %1918 = vsyncpa [#allocation9 + $0x1], 1 }

</bundles_post_ra>
